<compile_context>
chip_gen: v7x
topology: tpu7x:2x2x1
jax: 0.10.0
libtpu: 0.0.40
codegen_flags: <defaults>
</compile_context>

<pallas_src>
import functools

import jax
import jax.numpy as jnp
from jax.experimental import pallas as pl
from jax.experimental.pallas import tpu as pltpu


# ---------------------------------------------------------------------------
# Kernel 1: LSTM recurrence over a chunk of timesteps.
# ---------------------------------------------------------------------------
def _lstm_chunk_kernel(x_ref, wih_ref, whh_ref, b_ref, h_out_ref, h_sc, c_sc):
    """One grid step == T_CHUNK LSTM timesteps.

    x_ref    : (T_CHUNK, B_pad, E_pad)  bf16   inputs for this chunk
    wih_ref  : (E_pad, 4*H_pad)         bf16   input->gates weight (pre-transposed)
    whh_ref  : (H_pad, 4*H_pad)         bf16   hidden->gates weight (pre-transposed)
    b_ref    : (1, 4*H_pad)             f32    pre-summed bias (b_ih + b_hh)
    h_out_ref: (T_CHUNK, B_pad, H_pad)  bf16   hidden states for this chunk
    h_sc/c_sc: (B_pad, H_pad)           f32    LSTM state carried across chunks
    """
    @pl.when(pl.program_id(0) == 0)
    def _init():
        h_sc[...] = jnp.zeros_like(h_sc)
        c_sc[...] = jnp.zeros_like(c_sc)

    Hp = h_sc.shape[-1]
    wih = wih_ref[...]          # bf16, loaded once per chunk
    whh = whh_ref[...]          # bf16
    bias = b_ref[...]           # f32
    t_chunk = x_ref.shape[0]    # static python int

    h = h_sc[...]               # f32 [B_pad, H_pad]  (one vreg at test sizes)
    c = c_sc[...]               # f32 [B_pad, H_pad]

    # Short fixed trip-count -> fully unrolled at trace time.
    for t in range(t_chunk):
        x_t = x_ref[t]          # bf16 [B_pad, E_pad]
        gates = (jnp.dot(x_t, wih, preferred_element_type=jnp.float32)
                 + jnp.dot(h.astype(jnp.bfloat16), whh,
                           preferred_element_type=jnp.float32)
                 + bias)        # f32 [B_pad, 4*H_pad], PyTorch gate order i,f,g,o

        # H_pad is a multiple of 128 -> these slices are lane-aligned views.
        i_g = jax.nn.sigmoid(gates[:, 0 * Hp:1 * Hp])
        f_g = jax.nn.sigmoid(gates[:, 1 * Hp:2 * Hp])
        g_g = jnp.tanh(gates[:, 2 * Hp:3 * Hp])
        o_g = jax.nn.sigmoid(gates[:, 3 * Hp:4 * Hp])

        c = f_g * c + i_g * g_g
        h = o_g * jnp.tanh(c)
        h_out_ref[t] = h.astype(h_out_ref.dtype)

    h_sc[...] = h
    c_sc[...] = c


# ---------------------------------------------------------------------------
# Kernel 2: batched output projection  logits = h @ W_out^T + b_out
# ---------------------------------------------------------------------------
def _head_matmul_kernel(h_ref, w_ref, b_ref, o_ref):
    o_ref[...] = (jnp.dot(h_ref[...], w_ref[...],
                          preferred_element_type=jnp.float32)
                  + b_ref[...]).astype(o_ref.dtype)


# ---------------------------------------------------------------------------
# Helpers
# ---------------------------------------------------------------------------
def _round_up(x, m):
    return (x + m - 1) // m * m


def _pick_tile(dim, candidates=(256, 128, 64, 32, 16, 8)):
    for c in candidates:
        if dim % c == 0:
            return c
    return dim


def _pad_gate_weight(w, h, h_pad, in_dim, in_pad):
    """[4H, in_dim] -> [in_pad, 4*H_pad] bf16, padded per gate block, transposed."""
    w4 = w.reshape(4, h, in_dim)
    w4 = jnp.pad(w4, ((0, 0), (0, h_pad - h), (0, in_pad - in_dim)))
    return jnp.transpose(w4.reshape(4 * h_pad, in_pad)).astype(jnp.bfloat16)


# ---------------------------------------------------------------------------
# Forward wrapper — matches DecoderRNN.forward(features, captions)
# ---------------------------------------------------------------------------
@functools.partial(jax.jit, static_argnames=())
def decoder_rnn_forward(features, captions, params):
    """features: [B, E] f32, captions: [B, L] int32 -> logits [B, L, V] f32."""
    embed_w = params["embed_w"]          # [V, E]
    w_ih = params["w_ih"]                # [4H, E]
    w_hh = params["w_hh"]                # [4H, H]
    b_ih = params["b_ih"]                # [4H]
    b_hh = params["b_hh"]                # [4H]
    w_out = params["w_out"]              # [V, H]
    b_out = params["b_out"]              # [V]

    B, E = features.shape
    H = w_hh.shape[1]
    V = w_out.shape[0]

    # --- glue in plain JAX: embedding gather + concat feature as t=0 -------
    emb = jnp.take(embed_w, captions[:, :-1], axis=0)             # [B, L-1, E]
    seq = jnp.concatenate([features[:, None, :], emb], axis=1)    # [B, T, E]
    T = seq.shape[1]

    # --- pad everything to sublane/lane multiples ---------------------------
    T_CHUNK = 8
    B_pad = _round_up(B, 8)
    E_pad = _round_up(E, 128)
    H_pad = _round_up(H, 128)
    V_pad = _round_up(V, 128)
    T_pad = _round_up(T, T_CHUNK)

    x = jnp.transpose(seq, (1, 0, 2))                             # [T, B, E]
    x = jnp.pad(x, ((0, T_pad - T), (0, B_pad - B), (0, E_pad - E)))
    x = x.astype(jnp.bfloat16)                                    # [T_pad, B_pad, E_pad]

    wih_t = _pad_gate_weight(w_ih, H, H_pad, E, E_pad)            # [E_pad, 4*H_pad] bf16
    whh_t = _pad_gate_weight(w_hh, H, H_pad, H, H_pad)            # [H_pad, 4*H_pad] bf16
    bias = (b_ih + b_hh).reshape(4, H)
    bias = jnp.pad(bias, ((0, 0), (0, H_pad - H)))
    bias = bias.reshape(1, 4 * H_pad).astype(jnp.float32)         # pre-summed bias

    wout_t = jnp.pad(jnp.transpose(w_out),
                     ((0, H_pad - H), (0, V_pad - V))).astype(jnp.bfloat16)
    bout = jnp.pad(b_out, (0, V_pad - V)).reshape(1, V_pad).astype(jnp.float32)

    # --- kernel 1: recurrence --------------------------------------------
    num_chunks = T_pad // T_CHUNK
    full2 = lambda c: (0, 0)
    h_seq = pl.pallas_call(
        _lstm_chunk_kernel,
        out_shape=jax.ShapeDtypeStruct((T_pad, B_pad, H_pad), jnp.bfloat16),
        grid_spec=pltpu.PrefetchScalarGridSpec(
            num_scalar_prefetch=0,
            grid=(num_chunks,),
            in_specs=[
                pl.BlockSpec((T_CHUNK, B_pad, E_pad), lambda c: (c, 0, 0)),  # x chunk
                pl.BlockSpec((E_pad, 4 * H_pad), full2),                     # W_ih^T
                pl.BlockSpec((H_pad, 4 * H_pad), full2),                     # W_hh^T
                pl.BlockSpec((1, 4 * H_pad), full2),                         # bias
            ],
            out_specs=pl.BlockSpec((T_CHUNK, B_pad, H_pad), lambda c: (c, 0, 0)),
            scratch_shapes=[
                pltpu.VMEM((B_pad, H_pad), jnp.float32),   # h state
                pltpu.VMEM((B_pad, H_pad), jnp.float32),   # c state
            ],
        ),
        compiler_params=pltpu.CompilerParams(
            dimension_semantics=("arbitrary",),            # time is sequential
        ),
    )(x, wih_t, whh_t, bias)

    # --- kernel 2: one big lane-dense vocab projection ---------------------
    M = T_pad * B_pad
    h_flat = h_seq.reshape(M, H_pad)                       # [M, H_pad] bf16
    tm = _pick_tile(M)
    tn = _pick_tile(V_pad)

    logits = pl.pallas_call(
        _head_matmul_kernel,
        out_shape=jax.ShapeDtypeStruct((M, V_pad), jnp.float32),
        grid_spec=pltpu.PrefetchScalarGridSpec(
            num_scalar_prefetch=0,
            grid=(M // tm, V_pad // tn),
            in_specs=[
                pl.BlockSpec((tm, H_pad), lambda i, j: (i, 0)),   # h tile
                pl.BlockSpec((H_pad, tn), lambda i, j: (0, j)),   # W_out^T tile
                pl.BlockSpec((1, tn), lambda i, j: (0, j)),       # b_out tile
            ],
            out_specs=pl.BlockSpec((tm, tn), lambda i, j: (i, j)),
        ),
        compiler_params=pltpu.CompilerParams(
            dimension_semantics=("parallel", "parallel"),
        ),
    )(h_flat, wout_t, bout)

    logits = logits.reshape(T_pad, B_pad, V_pad)[:T, :B, :V]   # strip padding
    return jnp.transpose(logits, (1, 0, 2))                    # [B, T, V]


# ---------------------------------------------------------------------------
# Parameters + pure-JAX f32 reference (PyTorch semantics)
# ---------------------------------------------------------------------------
def init_params(key, embed_size, hidden_size, vocab_size):
    ks = jax.random.split(key, 7)
    s = 0.1
    return {
        "embed_w": s * jax.random.normal(ks[0], (vocab_size, embed_size), jnp.float32),
        "w_ih":    s * jax.random.normal(ks[1], (4 * hidden_size, embed_size), jnp.float32),
        "w_hh":    s * jax.random.normal(ks[2], (4 * hidden_size, hidden_size), jnp.float32),
        "b_ih":    s * jax.random.normal(ks[3], (4 * hidden_size,), jnp.float32),
        "b_hh":    s * jax.random.normal(ks[4], (4 * hidden_size,), jnp.float32),
        "w_out":   s * jax.random.normal(ks[5], (vocab_size, hidden_size), jnp.float32),
        "b_out":   s * jax.random.normal(ks[6], (vocab_size,), jnp.float32),
    }


def _reference_forward(features, captions, params):
    emb = jnp.take(params["embed_w"], captions[:, :-1], axis=0)
    seq = jnp.concatenate([features[:, None, :], emb], axis=1)
    B, T, E = seq.shape
    H = params["w_hh"].shape[1]

    def step(carry, x_t):
        h, c = carry
        gates = (x_t @ params["w_ih"].T + params["b_ih"]
                 + h @ params["w_hh"].T + params["b_hh"])
        i = jax.nn.sigmoid(gates[:, 0 * H:1 * H])
        f = jax.nn.sigmoid(gates[:, 1 * H:2 * H])
        g = jnp.tanh(gates[:, 2 * H:3 * H])
        o = jax.nn.sigmoid(gates[:, 3 * H:4 * H])
        c = f * c + i * g
        h = o * jnp.tanh(c)
        return (h, c), h

    h0 = jnp.zeros((B, H), jnp.float32)
    c0 = jnp.zeros((B, H), jnp.float32)
    _, hs = jax.lax.scan(step, (h0, c0), jnp.transpose(seq, (1, 0, 2)))
    hs = jnp.transpose(hs, (1, 0, 2))                        # [B, T, H]
    return hs @ params["w_out"].T + params["b_out"]          # [B, T, V]


if __name__ == "__main__":
    embed_size, hidden_size, vocab_size = 32, 32, 64
    batch, cap_len = 2, 8

    key = jax.random.PRNGKey(0)
    kp, kf, kc = jax.random.split(key, 3)
    params = init_params(kp, embed_size, hidden_size, vocab_size)

    features = jax.random.normal(kf, (batch, embed_size), jnp.float32)
    captions = jax.random.randint(kc, (batch, cap_len), 0, vocab_size, jnp.int32)

    out = decoder_rnn_forward(features, captions, params)
    out = jax.block_until_ready(out)

    ref = _reference_forward(features, captions, params)
    assert out.shape == (batch, cap_len, vocab_size), out.shape
    # bf16 matmul operands (f32 accumulation / f32 state) -> loosened tolerance
    # vs. the pure-f32 reference, as anticipated in the review.
    assert jnp.allclose(out, ref, atol=3e-2, rtol=3e-2), "mismatch vs reference"

    print("KERNEL_OK")
</pallas_src>

<mosaic_0001>
module attributes {stable_mosaic.version = 11 : i64} {
  func.func @_head_matmul_kernel(%arg0: i32, %arg1: i32, %arg2: memref<64x128xbf16, #tpu.memory_space<vmem>>, %arg3: memref<128x128xbf16, #tpu.memory_space<vmem>>, %arg4: memref<1x128xf32, #tpu.memory_space<vmem>>, %arg5: memref<64x128xf32, #tpu.memory_space<vmem>>) attributes {dimension_semantics = [#tpu.dimension_semantics<parallel>, #tpu.dimension_semantics<parallel>], iteration_bounds = array<i64: 1, 1>, scalar_prefetch = 0 : i64, scratch_operands = 0 : i64, tpu.core_type = #tpu.core_type<tc>, window_params = [{transform_indices = @transform_0, window_bounds = array<i64: 64, 128>}, {transform_indices = @transform_1, window_bounds = array<i64: 128, 128>}, {transform_indices = @transform_2, window_bounds = array<i64: 1, 128>}, {transform_indices = @transform_3, window_bounds = array<i64: 64, 128>}]} {
    %c0 = arith.constant 0 : index
    %c0_0 = arith.constant 0 : index
    %0 = vector.load %arg2[%c0, %c0_0] : memref<64x128xbf16, #tpu.memory_space<vmem>>, vector<64x128xbf16>
    %c0_1 = arith.constant 0 : index
    %c0_2 = arith.constant 0 : index
    %1 = vector.load %arg3[%c0_1, %c0_2] : memref<128x128xbf16, #tpu.memory_space<vmem>>, vector<128x128xbf16>
    %cst = arith.constant dense<0.000000e+00> : vector<64x128xf32>
    %2 = tpu.matmul %0, %1, %cst {dimension_numbers = #tpu.dot_dimension_numbers<[1], [0], [0], [1], [0, 0, 1, 1], [], []>} : vector<64x128xbf16>, vector<128x128xbf16>, vector<64x128xf32> -> vector<64x128xf32>
    %c0_3 = arith.constant 0 : index
    %c0_4 = arith.constant 0 : index
    %3 = vector.load %arg4[%c0_3, %c0_4] : memref<1x128xf32, #tpu.memory_space<vmem>>, vector<1x128xf32>
    %4 = vector.broadcast %3 : vector<1x128xf32> to vector<64x128xf32>
    %5 = arith.addf %2, %4 : vector<64x128xf32>
    %c0_5 = arith.constant 0 : index
    %c0_6 = arith.constant 0 : index
    %6 = vector.load %arg5[%c0_5, %c0_6] : memref<64x128xf32, #tpu.memory_space<vmem>>, vector<64x128xf32>
    tpu.vector_store %arg5[%c0_5, %c0_6], %5 {strides = array<i32>} : memref<64x128xf32, #tpu.memory_space<vmem>>, vector<64x128xf32>,
    return
  }
  func.func @transform_0(%arg0: i32, %arg1: i32) -> (i32, i32) {
    %c0_i32 = arith.constant 0 : i32
    %c0_i32_0 = arith.constant 0 : i32
    return %arg0, %c0_i32 : i32, i32
  }
  func.func @transform_1(%arg0: i32, %arg1: i32) -> (i32, i32) {
    %c0_i32 = arith.constant 0 : i32
    %c0_i32_0 = arith.constant 0 : i32
    return %c0_i32, %arg1 : i32, i32
  }
  func.func @transform_2(%arg0: i32, %arg1: i32) -> (i32, i32) {
    %c0_i32 = arith.constant 0 : i32
    %c0_i32_0 = arith.constant 0 : i32
    return %c0_i32, %arg1 : i32, i32
  }
  func.func @transform_3(%arg0: i32, %arg1: i32) -> (i32, i32) {
    %c0_i32 = arith.constant 0 : i32
    return %arg0, %arg1 : i32, i32
  }
}

module attributes {stable_mosaic.version = 11 : i64} {
  func.func @_lstm_chunk_kernel(%arg0: i32, %arg1: memref<8x8x128xbf16, #tpu.memory_space<vmem>>, %arg2: memref<128x512xbf16, #tpu.memory_space<vmem>>, %arg3: memref<128x512xbf16, #tpu.memory_space<vmem>>, %arg4: memref<1x512xf32, #tpu.memory_space<vmem>>, %arg5: memref<8x8x128xbf16, #tpu.memory_space<vmem>>, %arg6: memref<8x128xf32, #tpu.memory_space<vmem>>, %arg7: memref<8x128xf32, #tpu.memory_space<vmem>>) attributes {dimension_semantics = [#tpu.dimension_semantics<arbitrary>], iteration_bounds = array<i64: 1>, scalar_prefetch = 0 : i64, scratch_operands = 2 : i64, tpu.core_type = #tpu.core_type<tc>, window_params = [{transform_indices = @transform_0, window_bounds = array<i64: 8, 8, 128>}, {pipeline_mode = #tpu.pipeline_mode<synchronous>, transform_indices = @transform_1, window_bounds = array<i64: 128, 512>}, {pipeline_mode = #tpu.pipeline_mode<synchronous>, transform_indices = @transform_2, window_bounds = array<i64: 128, 512>}, {pipeline_mode = #tpu.pipeline_mode<synchronous>, transform_indices = @transform_3, window_bounds = array<i64: 1, 512>}, {transform_indices = @transform_4, window_bounds = array<i64: 8, 8, 128>}]} {
    %c0_i32 = arith.constant 0 : i32
    %0 = arith.cmpi eq, %arg0, %c0_i32 : i32
    %1 = arith.extui %0 : i1 to i32
    %c0_i32_0 = arith.constant 0 : i32
    %2 = arith.cmpi ne, %1, %c0_i32_0 : i32
    scf.if %2 {
      %cst_94 = arith.constant 0.000000e+00 : f32
      %306 = vector.broadcast %cst_94 : f32 to vector<8x128xf32>
      %c0_95 = arith.constant 0 : index
      %c0_96 = arith.constant 0 : index
      %307 = vector.load %arg6[%c0_95, %c0_96] : memref<8x128xf32, #tpu.memory_space<vmem>>, vector<8x128xf32>
      tpu.vector_store %arg6[%c0_95, %c0_96], %306 {strides = array<i32>} : memref<8x128xf32, #tpu.memory_space<vmem>>, vector<8x128xf32>,
      %cst_97 = arith.constant 0.000000e+00 : f32
      %308 = vector.broadcast %cst_97 : f32 to vector<8x128xf32>
      %c0_98 = arith.constant 0 : index
      %c0_99 = arith.constant 0 : index
      %309 = vector.load %arg7[%c0_98, %c0_99] : memref<8x128xf32, #tpu.memory_space<vmem>>, vector<8x128xf32>
      tpu.vector_store %arg7[%c0_98, %c0_99], %308 {strides = array<i32>} : memref<8x128xf32, #tpu.memory_space<vmem>>, vector<8x128xf32>,
    } else {
    }
    %c0 = arith.constant 0 : index
    %c0_1 = arith.constant 0 : index
    %3 = vector.load %arg2[%c0, %c0_1] : memref<128x512xbf16, #tpu.memory_space<vmem>>, vector<128x512xbf16>
    %c0_2 = arith.constant 0 : index
    %c0_3 = arith.constant 0 : index
    %4 = vector.load %arg3[%c0_2, %c0_3] : memref<128x512xbf16, #tpu.memory_space<vmem>>, vector<128x512xbf16>
    %c0_4 = arith.constant 0 : index
    %c0_5 = arith.constant 0 : index
    %5 = vector.load %arg4[%c0_4, %c0_5] : memref<1x512xf32, #tpu.memory_space<vmem>>, vector<1x512xf32>
    %c0_6 = arith.constant 0 : index
    %c0_7 = arith.constant 0 : index
    %6 = vector.load %arg6[%c0_6, %c0_7] : memref<8x128xf32, #tpu.memory_space<vmem>>, vector<8x128xf32>
    %c0_8 = arith.constant 0 : index
    %c0_9 = arith.constant 0 : index
    %7 = vector.load %arg7[%c0_8, %c0_9] : memref<8x128xf32, #tpu.memory_space<vmem>>, vector<8x128xf32>
    %c0_10 = arith.constant 0 : index
    %c0_11 = arith.constant 0 : index
    %c0_12 = arith.constant 0 : index
    %8 = vector.load %arg1[%c0_10, %c0_11, %c0_12] : memref<8x8x128xbf16, #tpu.memory_space<vmem>>, vector<1x8x128xbf16>
    %9 = vector.shape_cast %8 : vector<1x8x128xbf16> to vector<8x128xbf16>
    %cst = arith.constant dense<0.000000e+00> : vector<8x512xf32>
    %10 = tpu.matmul %9, %3, %cst {dimension_numbers = #tpu.dot_dimension_numbers<[1], [0], [0], [1], [0, 0, 1, 1], [], []>} : vector<8x128xbf16>, vector<128x512xbf16>, vector<8x512xf32> -> vector<8x512xf32>
    %11 = arith.truncf %6 : vector<8x128xf32> to vector<8x128xbf16>
    %cst_13 = arith.constant dense<0.000000e+00> : vector<8x512xf32>
    %12 = tpu.matmul %11, %4, %cst_13 {dimension_numbers = #tpu.dot_dimension_numbers<[1], [0], [0], [1], [0, 0, 1, 1], [], []>} : vector<8x128xbf16>, vector<128x512xbf16>, vector<8x512xf32> -> vector<8x512xf32>
    %13 = arith.addf %10, %12 : vector<8x512xf32>
    %14 = vector.broadcast %5 : vector<1x512xf32> to vector<8x512xf32>
    %15 = arith.addf %13, %14 : vector<8x512xf32>
    %16 = vector.extract_strided_slice %15 {offsets = [0, 0], sizes = [8, 128], strides = [1, 1]} : vector<8x512xf32> to vector<8x128xf32>
    %17 = arith.negf %16 : vector<8x128xf32>
    %18 = math.exp %17 : vector<8x128xf32>
    %cst_14 = arith.constant 1.000000e+00 : f32
    %19 = vector.broadcast %cst_14 : f32 to vector<8x128xf32>
    %20 = arith.addf %19, %18 : vector<8x128xf32>
    %21 = arith.divf %19, %20 : vector<8x128xf32>
    %22 = vector.extract_strided_slice %15 {offsets = [0, 128], sizes = [8, 128], strides = [1, 1]} : vector<8x512xf32> to vector<8x128xf32>
    %23 = arith.negf %22 : vector<8x128xf32>
    %24 = math.exp %23 : vector<8x128xf32>
    %cst_15 = arith.constant 1.000000e+00 : f32
    %25 = vector.broadcast %cst_15 : f32 to vector<8x128xf32>
    %26 = arith.addf %25, %24 : vector<8x128xf32>
    %27 = arith.divf %25, %26 : vector<8x128xf32>
    %28 = vector.extract_strided_slice %15 {offsets = [0, 256], sizes = [8, 128], strides = [1, 1]} : vector<8x512xf32> to vector<8x128xf32>
    %29 = math.tanh %28 : vector<8x128xf32>
    %30 = vector.extract_strided_slice %15 {offsets = [0, 384], sizes = [8, 128], strides = [1, 1]} : vector<8x512xf32> to vector<8x128xf32>
    %31 = arith.negf %30 : vector<8x128xf32>
    %32 = math.exp %31 : vector<8x128xf32>
    %cst_16 = arith.constant 1.000000e+00 : f32
    %33 = vector.broadcast %cst_16 : f32 to vector<8x128xf32>
    %34 = arith.addf %33, %32 : vector<8x128xf32>
    %35 = arith.divf %33, %34 : vector<8x128xf32>
    %36 = arith.mulf %27, %7 : vector<8x128xf32>
    %37 = arith.mulf %21, %29 : vector<8x128xf32>
    %38 = arith.addf %36, %37 : vector<8x128xf32>
    %39 = math.tanh %38 : vector<8x128xf32>
    %40 = arith.mulf %35, %39 : vector<8x128xf32>
    %41 = arith.truncf %40 : vector<8x128xf32> to vector<8x128xbf16>
    %c0_17 = arith.constant 0 : index
    %c0_18 = arith.constant 0 : index
    %c0_19 = arith.constant 0 : index
    %42 = vector.load %arg5[%c0_17, %c0_18, %c0_19] : memref<8x8x128xbf16, #tpu.memory_space<vmem>>, vector<1x8x128xbf16>
    %43 = vector.shape_cast %42 : vector<1x8x128xbf16> to vector<8x128xbf16>
    %44 = vector.shape_cast %41 : vector<8x128xbf16> to vector<1x8x128xbf16>
    tpu.vector_store %arg5[%c0_17, %c0_18, %c0_19], %44 {strides = array<i32>} : memref<8x8x128xbf16, #tpu.memory_space<vmem>>, vector<1x8x128xbf16>,
    %c1 = arith.constant 1 : index
    %c0_20 = arith.constant 0 : index
    %c0_21 = arith.constant 0 : index
    %45 = vector.load %arg1[%c1, %c0_20, %c0_21] : memref<8x8x128xbf16, #tpu.memory_space<vmem>>, vector<1x8x128xbf16>
    %46 = vector.shape_cast %45 : vector<1x8x128xbf16> to vector<8x128xbf16>
    %cst_22 = arith.constant dense<0.000000e+00> : vector<8x512xf32>
    %47 = tpu.matmul %46, %3, %cst_22 {dimension_numbers = #tpu.dot_dimension_numbers<[1], [0], [0], [1], [0, 0, 1, 1], [], []>} : vector<8x128xbf16>, vector<128x512xbf16>, vector<8x512xf32> -> vector<8x512xf32>
    %48 = arith.truncf %40 : vector<8x128xf32> to vector<8x128xbf16>
    %cst_23 = arith.constant dense<0.000000e+00> : vector<8x512xf32>
    %49 = tpu.matmul %48, %4, %cst_23 {dimension_numbers = #tpu.dot_dimension_numbers<[1], [0], [0], [1], [0, 0, 1, 1], [], []>} : vector<8x128xbf16>, vector<128x512xbf16>, vector<8x512xf32> -> vector<8x512xf32>
    %50 = arith.addf %47, %49 : vector<8x512xf32>
    %51 = vector.broadcast %5 : vector<1x512xf32> to vector<8x512xf32>
    %52 = arith.addf %50, %51 : vector<8x512xf32>
    %53 = vector.extract_strided_slice %52 {offsets = [0, 0], sizes = [8, 128], strides = [1, 1]} : vector<8x512xf32> to vector<8x128xf32>
    %54 = arith.negf %53 : vector<8x128xf32>
    %55 = math.exp %54 : vector<8x128xf32>
    %cst_24 = arith.constant 1.000000e+00 : f32
    %56 = vector.broadcast %cst_24 : f32 to vector<8x128xf32>
    %57 = arith.addf %56, %55 : vector<8x128xf32>
    %58 = arith.divf %56, %57 : vector<8x128xf32>
    %59 = vector.extract_strided_slice %52 {offsets = [0, 128], sizes = [8, 128], strides = [1, 1]} : vector<8x512xf32> to vector<8x128xf32>
    %60 = arith.negf %59 : vector<8x128xf32>
    %61 = math.exp %60 : vector<8x128xf32>
    %cst_25 = arith.constant 1.000000e+00 : f32
    %62 = vector.broadcast %cst_25 : f32 to vector<8x128xf32>
    %63 = arith.addf %62, %61 : vector<8x128xf32>
    %64 = arith.divf %62, %63 : vector<8x128xf32>
    %65 = vector.extract_strided_slice %52 {offsets = [0, 256], sizes = [8, 128], strides = [1, 1]} : vector<8x512xf32> to vector<8x128xf32>
    %66 = math.tanh %65 : vector<8x128xf32>
    %67 = vector.extract_strided_slice %52 {offsets = [0, 384], sizes = [8, 128], strides = [1, 1]} : vector<8x512xf32> to vector<8x128xf32>
    %68 = arith.negf %67 : vector<8x128xf32>
    %69 = math.exp %68 : vector<8x128xf32>
    %cst_26 = arith.constant 1.000000e+00 : f32
    %70 = vector.broadcast %cst_26 : f32 to vector<8x128xf32>
    %71 = arith.addf %70, %69 : vector<8x128xf32>
    %72 = arith.divf %70, %71 : vector<8x128xf32>
    %73 = arith.mulf %64, %38 : vector<8x128xf32>
    %74 = arith.mulf %58, %66 : vector<8x128xf32>
    %75 = arith.addf %73, %74 : vector<8x128xf32>
    %76 = math.tanh %75 : vector<8x128xf32>
    %77 = arith.mulf %72, %76 : vector<8x128xf32>
    %78 = arith.truncf %77 : vector<8x128xf32> to vector<8x128xbf16>
    %c1_27 = arith.constant 1 : index
    %c0_28 = arith.constant 0 : index
    %c0_29 = arith.constant 0 : index
    %79 = vector.load %arg5[%c1_27, %c0_28, %c0_29] : memref<8x8x128xbf16, #tpu.memory_space<vmem>>, vector<1x8x128xbf16>
    %80 = vector.shape_cast %79 : vector<1x8x128xbf16> to vector<8x128xbf16>
    %81 = vector.shape_cast %78 : vector<8x128xbf16> to vector<1x8x128xbf16>
    tpu.vector_store %arg5[%c1_27, %c0_28, %c0_29], %81 {strides = array<i32>} : memref<8x8x128xbf16, #tpu.memory_space<vmem>>, vector<1x8x128xbf16>,
    %c2 = arith.constant 2 : index
    %c0_30 = arith.constant 0 : index
    %c0_31 = arith.constant 0 : index
    %82 = vector.load %arg1[%c2, %c0_30, %c0_31] : memref<8x8x128xbf16, #tpu.memory_space<vmem>>, vector<1x8x128xbf16>
    %83 = vector.shape_cast %82 : vector<1x8x128xbf16> to vector<8x128xbf16>
    %cst_32 = arith.constant dense<0.000000e+00> : vector<8x512xf32>
    %84 = tpu.matmul %83, %3, %cst_32 {dimension_numbers = #tpu.dot_dimension_numbers<[1], [0], [0], [1], [0, 0, 1, 1], [], []>} : vector<8x128xbf16>, vector<128x512xbf16>, vector<8x512xf32> -> vector<8x512xf32>
    %85 = arith.truncf %77 : vector<8x128xf32> to vector<8x128xbf16>
    %cst_33 = arith.constant dense<0.000000e+00> : vector<8x512xf32>
    %86 = tpu.matmul %85, %4, %cst_33 {dimension_numbers = #tpu.dot_dimension_numbers<[1], [0], [0], [1], [0, 0, 1, 1], [], []>} : vector<8x128xbf16>, vector<128x512xbf16>, vector<8x512xf32> -> vector<8x512xf32>
    %87 = arith.addf %84, %86 : vector<8x512xf32>
    %88 = vector.broadcast %5 : vector<1x512xf32> to vector<8x512xf32>
    %89 = arith.addf %87, %88 : vector<8x512xf32>
    %90 = vector.extract_strided_slice %89 {offsets = [0, 0], sizes = [8, 128], strides = [1, 1]} : vector<8x512xf32> to vector<8x128xf32>
    %91 = arith.negf %90 : vector<8x128xf32>
    %92 = math.exp %91 : vector<8x128xf32>
    %cst_34 = arith.constant 1.000000e+00 : f32
    %93 = vector.broadcast %cst_34 : f32 to vector<8x128xf32>
    %94 = arith.addf %93, %92 : vector<8x128xf32>
    %95 = arith.divf %93, %94 : vector<8x128xf32>
    %96 = vector.extract_strided_slice %89 {offsets = [0, 128], sizes = [8, 128], strides = [1, 1]} : vector<8x512xf32> to vector<8x128xf32>
    %97 = arith.negf %96 : vector<8x128xf32>
    %98 = math.exp %97 : vector<8x128xf32>
    %cst_35 = arith.constant 1.000000e+00 : f32
    %99 = vector.broadcast %cst_35 : f32 to vector<8x128xf32>
    %100 = arith.addf %99, %98 : vector<8x128xf32>
    %101 = arith.divf %99, %100 : vector<8x128xf32>
    %102 = vector.extract_strided_slice %89 {offsets = [0, 256], sizes = [8, 128], strides = [1, 1]} : vector<8x512xf32> to vector<8x128xf32>
    %103 = math.tanh %102 : vector<8x128xf32>
    %104 = vector.extract_strided_slice %89 {offsets = [0, 384], sizes = [8, 128], strides = [1, 1]} : vector<8x512xf32> to vector<8x128xf32>
    %105 = arith.negf %104 : vector<8x128xf32>
    %106 = math.exp %105 : vector<8x128xf32>
    %cst_36 = arith.constant 1.000000e+00 : f32
    %107 = vector.broadcast %cst_36 : f32 to vector<8x128xf32>
    %108 = arith.addf %107, %106 : vector<8x128xf32>
    %109 = arith.divf %107, %108 : vector<8x128xf32>
    %110 = arith.mulf %101, %75 : vector<8x128xf32>
    %111 = arith.mulf %95, %103 : vector<8x128xf32>
    %112 = arith.addf %110, %111 : vector<8x128xf32>
    %113 = math.tanh %112 : vector<8x128xf32>
    %114 = arith.mulf %109, %113 : vector<8x128xf32>
    %115 = arith.truncf %114 : vector<8x128xf32> to vector<8x128xbf16>
    %c2_37 = arith.constant 2 : index
    %c0_38 = arith.constant 0 : index
    %c0_39 = arith.constant 0 : index
    %116 = vector.load %arg5[%c2_37, %c0_38, %c0_39] : memref<8x8x128xbf16, #tpu.memory_space<vmem>>, vector<1x8x128xbf16>
    %117 = vector.shape_cast %116 : vector<1x8x128xbf16> to vector<8x128xbf16>
    %118 = vector.shape_cast %115 : vector<8x128xbf16> to vector<1x8x128xbf16>
    tpu.vector_store %arg5[%c2_37, %c0_38, %c0_39], %118 {strides = array<i32>} : memref<8x8x128xbf16, #tpu.memory_space<vmem>>, vector<1x8x128xbf16>,
    %c3 = arith.constant 3 : index
    %c0_40 = arith.constant 0 : index
    %c0_41 = arith.constant 0 : index
    %119 = vector.load %arg1[%c3, %c0_40, %c0_41] : memref<8x8x128xbf16, #tpu.memory_space<vmem>>, vector<1x8x128xbf16>
    %120 = vector.shape_cast %119 : vector<1x8x128xbf16> to vector<8x128xbf16>
    %cst_42 = arith.constant dense<0.000000e+00> : vector<8x512xf32>
    %121 = tpu.matmul %120, %3, %cst_42 {dimension_numbers = #tpu.dot_dimension_numbers<[1], [0], [0], [1], [0, 0, 1, 1], [], []>} : vector<8x128xbf16>, vector<128x512xbf16>, vector<8x512xf32> -> vector<8x512xf32>
    %122 = arith.truncf %114 : vector<8x128xf32> to vector<8x128xbf16>
    %cst_43 = arith.constant dense<0.000000e+00> : vector<8x512xf32>
    %123 = tpu.matmul %122, %4, %cst_43 {dimension_numbers = #tpu.dot_dimension_numbers<[1], [0], [0], [1], [0, 0, 1, 1], [], []>} : vector<8x128xbf16>, vector<128x512xbf16>, vector<8x512xf32> -> vector<8x512xf32>
    %124 = arith.addf %121, %123 : vector<8x512xf32>
    %125 = vector.broadcast %5 : vector<1x512xf32> to vector<8x512xf32>
    %126 = arith.addf %124, %125 : vector<8x512xf32>
    %127 = vector.extract_strided_slice %126 {offsets = [0, 0], sizes = [8, 128], strides = [1, 1]} : vector<8x512xf32> to vector<8x128xf32>
    %128 = arith.negf %127 : vector<8x128xf32>
    %129 = math.exp %128 : vector<8x128xf32>
    %cst_44 = arith.constant 1.000000e+00 : f32
    %130 = vector.broadcast %cst_44 : f32 to vector<8x128xf32>
    %131 = arith.addf %130, %129 : vector<8x128xf32>
    %132 = arith.divf %130, %131 : vector<8x128xf32>
    %133 = vector.extract_strided_slice %126 {offsets = [0, 128], sizes = [8, 128], strides = [1, 1]} : vector<8x512xf32> to vector<8x128xf32>
    %134 = arith.negf %133 : vector<8x128xf32>
    %135 = math.exp %134 : vector<8x128xf32>
    %cst_45 = arith.constant 1.000000e+00 : f32
    %136 = vector.broadcast %cst_45 : f32 to vector<8x128xf32>
    %137 = arith.addf %136, %135 : vector<8x128xf32>
    %138 = arith.divf %136, %137 : vector<8x128xf32>
    %139 = vector.extract_strided_slice %126 {offsets = [0, 256], sizes = [8, 128], strides = [1, 1]} : vector<8x512xf32> to vector<8x128xf32>
    %140 = math.tanh %139 : vector<8x128xf32>
    %141 = vector.extract_strided_slice %126 {offsets = [0, 384], sizes = [8, 128], strides = [1, 1]} : vector<8x512xf32> to vector<8x128xf32>
    %142 = arith.negf %141 : vector<8x128xf32>
    %143 = math.exp %142 : vector<8x128xf32>
    %cst_46 = arith.constant 1.000000e+00 : f32
    %144 = vector.broadcast %cst_46 : f32 to vector<8x128xf32>
    %145 = arith.addf %144, %143 : vector<8x128xf32>
    %146 = arith.divf %144, %145 : vector<8x128xf32>
    %147 = arith.mulf %138, %112 : vector<8x128xf32>
    %148 = arith.mulf %132, %140 : vector<8x128xf32>
    %149 = arith.addf %147, %148 : vector<8x128xf32>
    %150 = math.tanh %149 : vector<8x128xf32>
    %151 = arith.mulf %146, %150 : vector<8x128xf32>
    %152 = arith.truncf %151 : vector<8x128xf32> to vector<8x128xbf16>
    %c3_47 = arith.constant 3 : index
    %c0_48 = arith.constant 0 : index
    %c0_49 = arith.constant 0 : index
    %153 = vector.load %arg5[%c3_47, %c0_48, %c0_49] : memref<8x8x128xbf16, #tpu.memory_space<vmem>>, vector<1x8x128xbf16>
    %154 = vector.shape_cast %153 : vector<1x8x128xbf16> to vector<8x128xbf16>
    %155 = vector.shape_cast %152 : vector<8x128xbf16> to vector<1x8x128xbf16>
    tpu.vector_store %arg5[%c3_47, %c0_48, %c0_49], %155 {strides = array<i32>} : memref<8x8x128xbf16, #tpu.memory_space<vmem>>, vector<1x8x128xbf16>,
    %c4 = arith.constant 4 : index
    %c0_50 = arith.constant 0 : index
    %c0_51 = arith.constant 0 : index
    %156 = vector.load %arg1[%c4, %c0_50, %c0_51] : memref<8x8x128xbf16, #tpu.memory_space<vmem>>, vector<1x8x128xbf16>
    %157 = vector.shape_cast %156 : vector<1x8x128xbf16> to vector<8x128xbf16>
    %cst_52 = arith.constant dense<0.000000e+00> : vector<8x512xf32>
    %158 = tpu.matmul %157, %3, %cst_52 {dimension_numbers = #tpu.dot_dimension_numbers<[1], [0], [0], [1], [0, 0, 1, 1], [], []>} : vector<8x128xbf16>, vector<128x512xbf16>, vector<8x512xf32> -> vector<8x512xf32>
    %159 = arith.truncf %151 : vector<8x128xf32> to vector<8x128xbf16>
    %cst_53 = arith.constant dense<0.000000e+00> : vector<8x512xf32>
    %160 = tpu.matmul %159, %4, %cst_53 {dimension_numbers = #tpu.dot_dimension_numbers<[1], [0], [0], [1], [0, 0, 1, 1], [], []>} : vector<8x128xbf16>, vector<128x512xbf16>, vector<8x512xf32> -> vector<8x512xf32>
    %161 = arith.addf %158, %160 : vector<8x512xf32>
    %162 = vector.broadcast %5 : vector<1x512xf32> to vector<8x512xf32>
    %163 = arith.addf %161, %162 : vector<8x512xf32>
    %164 = vector.extract_strided_slice %163 {offsets = [0, 0], sizes = [8, 128], strides = [1, 1]} : vector<8x512xf32> to vector<8x128xf32>
    %165 = arith.negf %164 : vector<8x128xf32>
    %166 = math.exp %165 : vector<8x128xf32>
    %cst_54 = arith.constant 1.000000e+00 : f32
    %167 = vector.broadcast %cst_54 : f32 to vector<8x128xf32>
    %168 = arith.addf %167, %166 : vector<8x128xf32>
    %169 = arith.divf %167, %168 : vector<8x128xf32>
    %170 = vector.extract_strided_slice %163 {offsets = [0, 128], sizes = [8, 128], strides = [1, 1]} : vector<8x512xf32> to vector<8x128xf32>
    %171 = arith.negf %170 : vector<8x128xf32>
    %172 = math.exp %171 : vector<8x128xf32>
    %cst_55 = arith.constant 1.000000e+00 : f32
    %173 = vector.broadcast %cst_55 : f32 to vector<8x128xf32>
    %174 = arith.addf %173, %172 : vector<8x128xf32>
    %175 = arith.divf %173, %174 : vector<8x128xf32>
    %176 = vector.extract_strided_slice %163 {offsets = [0, 256], sizes = [8, 128], strides = [1, 1]} : vector<8x512xf32> to vector<8x128xf32>
    %177 = math.tanh %176 : vector<8x128xf32>
    %178 = vector.extract_strided_slice %163 {offsets = [0, 384], sizes = [8, 128], strides = [1, 1]} : vector<8x512xf32> to vector<8x128xf32>
    %179 = arith.negf %178 : vector<8x128xf32>
    %180 = math.exp %179 : vector<8x128xf32>
    %cst_56 = arith.constant 1.000000e+00 : f32
    %181 = vector.broadcast %cst_56 : f32 to vector<8x128xf32>
    %182 = arith.addf %181, %180 : vector<8x128xf32>
    %183 = arith.divf %181, %182 : vector<8x128xf32>
    %184 = arith.mulf %175, %149 : vector<8x128xf32>
    %185 = arith.mulf %169, %177 : vector<8x128xf32>
    %186 = arith.addf %184, %185 : vector<8x128xf32>
    %187 = math.tanh %186 : vector<8x128xf32>
    %188 = arith.mulf %183, %187 : vector<8x128xf32>
    %189 = arith.truncf %188 : vector<8x128xf32> to vector<8x128xbf16>
    %c4_57 = arith.constant 4 : index
    %c0_58 = arith.constant 0 : index
    %c0_59 = arith.constant 0 : index
    %190 = vector.load %arg5[%c4_57, %c0_58, %c0_59] : memref<8x8x128xbf16, #tpu.memory_space<vmem>>, vector<1x8x128xbf16>
    %191 = vector.shape_cast %190 : vector<1x8x128xbf16> to vector<8x128xbf16>
    %192 = vector.shape_cast %189 : vector<8x128xbf16> to vector<1x8x128xbf16>
    tpu.vector_store %arg5[%c4_57, %c0_58, %c0_59], %192 {strides = array<i32>} : memref<8x8x128xbf16, #tpu.memory_space<vmem>>, vector<1x8x128xbf16>,
    %c5 = arith.constant 5 : index
    %c0_60 = arith.constant 0 : index
    %c0_61 = arith.constant 0 : index
    %193 = vector.load %arg1[%c5, %c0_60, %c0_61] : memref<8x8x128xbf16, #tpu.memory_space<vmem>>, vector<1x8x128xbf16>
    %194 = vector.shape_cast %193 : vector<1x8x128xbf16> to vector<8x128xbf16>
    %cst_62 = arith.constant dense<0.000000e+00> : vector<8x512xf32>
    %195 = tpu.matmul %194, %3, %cst_62 {dimension_numbers = #tpu.dot_dimension_numbers<[1], [0], [0], [1], [0, 0, 1, 1], [], []>} : vector<8x128xbf16>, vector<128x512xbf16>, vector<8x512xf32> -> vector<8x512xf32>
    %196 = arith.truncf %188 : vector<8x128xf32> to vector<8x128xbf16>
    %cst_63 = arith.constant dense<0.000000e+00> : vector<8x512xf32>
    %197 = tpu.matmul %196, %4, %cst_63 {dimension_numbers = #tpu.dot_dimension_numbers<[1], [0], [0], [1], [0, 0, 1, 1], [], []>} : vector<8x128xbf16>, vector<128x512xbf16>, vector<8x512xf32> -> vector<8x512xf32>
    %198 = arith.addf %195, %197 : vector<8x512xf32>
    %199 = vector.broadcast %5 : vector<1x512xf32> to vector<8x512xf32>
    %200 = arith.addf %198, %199 : vector<8x512xf32>
    %201 = vector.extract_strided_slice %200 {offsets = [0, 0], sizes = [8, 128], strides = [1, 1]} : vector<8x512xf32> to vector<8x128xf32>
    %202 = arith.negf %201 : vector<8x128xf32>
    %203 = math.exp %202 : vector<8x128xf32>
    %cst_64 = arith.constant 1.000000e+00 : f32
    %204 = vector.broadcast %cst_64 : f32 to vector<8x128xf32>
    %205 = arith.addf %204, %203 : vector<8x128xf32>
    %206 = arith.divf %204, %205 : vector<8x128xf32>
    %207 = vector.extract_strided_slice %200 {offsets = [0, 128], sizes = [8, 128], strides = [1, 1]} : vector<8x512xf32> to vector<8x128xf32>
    %208 = arith.negf %207 : vector<8x128xf32>
    %209 = math.exp %208 : vector<8x128xf32>
    %cst_65 = arith.constant 1.000000e+00 : f32
    %210 = vector.broadcast %cst_65 : f32 to vector<8x128xf32>
    %211 = arith.addf %210, %209 : vector<8x128xf32>
    %212 = arith.divf %210, %211 : vector<8x128xf32>
    %213 = vector.extract_strided_slice %200 {offsets = [0, 256], sizes = [8, 128], strides = [1, 1]} : vector<8x512xf32> to vector<8x128xf32>
    %214 = math.tanh %213 : vector<8x128xf32>
    %215 = vector.extract_strided_slice %200 {offsets = [0, 384], sizes = [8, 128], strides = [1, 1]} : vector<8x512xf32> to vector<8x128xf32>
    %216 = arith.negf %215 : vector<8x128xf32>
    %217 = math.exp %216 : vector<8x128xf32>
    %cst_66 = arith.constant 1.000000e+00 : f32
    %218 = vector.broadcast %cst_66 : f32 to vector<8x128xf32>
    %219 = arith.addf %218, %217 : vector<8x128xf32>
    %220 = arith.divf %218, %219 : vector<8x128xf32>
    %221 = arith.mulf %212, %186 : vector<8x128xf32>
    %222 = arith.mulf %206, %214 : vector<8x128xf32>
    %223 = arith.addf %221, %222 : vector<8x128xf32>
    %224 = math.tanh %223 : vector<8x128xf32>
    %225 = arith.mulf %220, %224 : vector<8x128xf32>
    %226 = arith.truncf %225 : vector<8x128xf32> to vector<8x128xbf16>
    %c5_67 = arith.constant 5 : index
    %c0_68 = arith.constant 0 : index
    %c0_69 = arith.constant 0 : index
    %227 = vector.load %arg5[%c5_67, %c0_68, %c0_69] : memref<8x8x128xbf16, #tpu.memory_space<vmem>>, vector<1x8x128xbf16>
    %228 = vector.shape_cast %227 : vector<1x8x128xbf16> to vector<8x128xbf16>
    %229 = vector.shape_cast %226 : vector<8x128xbf16> to vector<1x8x128xbf16>
    tpu.vector_store %arg5[%c5_67, %c0_68, %c0_69], %229 {strides = array<i32>} : memref<8x8x128xbf16, #tpu.memory_space<vmem>>, vector<1x8x128xbf16>,
    %c6 = arith.constant 6 : index
    %c0_70 = arith.constant 0 : index
    %c0_71 = arith.constant 0 : index
    %230 = vector.load %arg1[%c6, %c0_70, %c0_71] : memref<8x8x128xbf16, #tpu.memory_space<vmem>>, vector<1x8x128xbf16>
    %231 = vector.shape_cast %230 : vector<1x8x128xbf16> to vector<8x128xbf16>
    %cst_72 = arith.constant dense<0.000000e+00> : vector<8x512xf32>
    %232 = tpu.matmul %231, %3, %cst_72 {dimension_numbers = #tpu.dot_dimension_numbers<[1], [0], [0], [1], [0, 0, 1, 1], [], []>} : vector<8x128xbf16>, vector<128x512xbf16>, vector<8x512xf32> -> vector<8x512xf32>
    %233 = arith.truncf %225 : vector<8x128xf32> to vector<8x128xbf16>
    %cst_73 = arith.constant dense<0.000000e+00> : vector<8x512xf32>
    %234 = tpu.matmul %233, %4, %cst_73 {dimension_numbers = #tpu.dot_dimension_numbers<[1], [0], [0], [1], [0, 0, 1, 1], [], []>} : vector<8x128xbf16>, vector<128x512xbf16>, vector<8x512xf32> -> vector<8x512xf32>
    %235 = arith.addf %232, %234 : vector<8x512xf32>
    %236 = vector.broadcast %5 : vector<1x512xf32> to vector<8x512xf32>
    %237 = arith.addf %235, %236 : vector<8x512xf32>
    %238 = vector.extract_strided_slice %237 {offsets = [0, 0], sizes = [8, 128], strides = [1, 1]} : vector<8x512xf32> to vector<8x128xf32>
    %239 = arith.negf %238 : vector<8x128xf32>
    %240 = math.exp %239 : vector<8x128xf32>
    %cst_74 = arith.constant 1.000000e+00 : f32
    %241 = vector.broadcast %cst_74 : f32 to vector<8x128xf32>
    %242 = arith.addf %241, %240 : vector<8x128xf32>
    %243 = arith.divf %241, %242 : vector<8x128xf32>
    %244 = vector.extract_strided_slice %237 {offsets = [0, 128], sizes = [8, 128], strides = [1, 1]} : vector<8x512xf32> to vector<8x128xf32>
    %245 = arith.negf %244 : vector<8x128xf32>
    %246 = math.exp %245 : vector<8x128xf32>
    %cst_75 = arith.constant 1.000000e+00 : f32
    %247 = vector.broadcast %cst_75 : f32 to vector<8x128xf32>
    %248 = arith.addf %247, %246 : vector<8x128xf32>
    %249 = arith.divf %247, %248 : vector<8x128xf32>
    %250 = vector.extract_strided_slice %237 {offsets = [0, 256], sizes = [8, 128], strides = [1, 1]} : vector<8x512xf32> to vector<8x128xf32>
    %251 = math.tanh %250 : vector<8x128xf32>
    %252 = vector.extract_strided_slice %237 {offsets = [0, 384], sizes = [8, 128], strides = [1, 1]} : vector<8x512xf32> to vector<8x128xf32>
    %253 = arith.negf %252 : vector<8x128xf32>
    %254 = math.exp %253 : vector<8x128xf32>
    %cst_76 = arith.constant 1.000000e+00 : f32
    %255 = vector.broadcast %cst_76 : f32 to vector<8x128xf32>
    %256 = arith.addf %255, %254 : vector<8x128xf32>
    %257 = arith.divf %255, %256 : vector<8x128xf32>
    %258 = arith.mulf %249, %223 : vector<8x128xf32>
    %259 = arith.mulf %243, %251 : vector<8x128xf32>
    %260 = arith.addf %258, %259 : vector<8x128xf32>
    %261 = math.tanh %260 : vector<8x128xf32>
    %262 = arith.mulf %257, %261 : vector<8x128xf32>
    %263 = arith.truncf %262 : vector<8x128xf32> to vector<8x128xbf16>
    %c6_77 = arith.constant 6 : index
    %c0_78 = arith.constant 0 : index
    %c0_79 = arith.constant 0 : index
    %264 = vector.load %arg5[%c6_77, %c0_78, %c0_79] : memref<8x8x128xbf16, #tpu.memory_space<vmem>>, vector<1x8x128xbf16>
    %265 = vector.shape_cast %264 : vector<1x8x128xbf16> to vector<8x128xbf16>
    %266 = vector.shape_cast %263 : vector<8x128xbf16> to vector<1x8x128xbf16>
    tpu.vector_store %arg5[%c6_77, %c0_78, %c0_79], %266 {strides = array<i32>} : memref<8x8x128xbf16, #tpu.memory_space<vmem>>, vector<1x8x128xbf16>,
    %c7 = arith.constant 7 : index
    %c0_80 = arith.constant 0 : index
    %c0_81 = arith.constant 0 : index
    %267 = vector.load %arg1[%c7, %c0_80, %c0_81] : memref<8x8x128xbf16, #tpu.memory_space<vmem>>, vector<1x8x128xbf16>
    %268 = vector.shape_cast %267 : vector<1x8x128xbf16> to vector<8x128xbf16>
    %cst_82 = arith.constant dense<0.000000e+00> : vector<8x512xf32>
    %269 = tpu.matmul %268, %3, %cst_82 {dimension_numbers = #tpu.dot_dimension_numbers<[1], [0], [0], [1], [0, 0, 1, 1], [], []>} : vector<8x128xbf16>, vector<128x512xbf16>, vector<8x512xf32> -> vector<8x512xf32>
    %270 = arith.truncf %262 : vector<8x128xf32> to vector<8x128xbf16>
    %cst_83 = arith.constant dense<0.000000e+00> : vector<8x512xf32>
    %271 = tpu.matmul %270, %4, %cst_83 {dimension_numbers = #tpu.dot_dimension_numbers<[1], [0], [0], [1], [0, 0, 1, 1], [], []>} : vector<8x128xbf16>, vector<128x512xbf16>, vector<8x512xf32> -> vector<8x512xf32>
    %272 = arith.addf %269, %271 : vector<8x512xf32>
    %273 = vector.broadcast %5 : vector<1x512xf32> to vector<8x512xf32>
    %274 = arith.addf %272, %273 : vector<8x512xf32>
    %275 = vector.extract_strided_slice %274 {offsets = [0, 0], sizes = [8, 128], strides = [1, 1]} : vector<8x512xf32> to vector<8x128xf32>
    %276 = arith.negf %275 : vector<8x128xf32>
    %277 = math.exp %276 : vector<8x128xf32>
    %cst_84 = arith.constant 1.000000e+00 : f32
    %278 = vector.broadcast %cst_84 : f32 to vector<8x128xf32>
    %279 = arith.addf %278, %277 : vector<8x128xf32>
    %280 = arith.divf %278, %279 : vector<8x128xf32>
    %281 = vector.extract_strided_slice %274 {offsets = [0, 128], sizes = [8, 128], strides = [1, 1]} : vector<8x512xf32> to vector<8x128xf32>
    %282 = arith.negf %281 : vector<8x128xf32>
    %283 = math.exp %282 : vector<8x128xf32>
    %cst_85 = arith.constant 1.000000e+00 : f32
    %284 = vector.broadcast %cst_85 : f32 to vector<8x128xf32>
    %285 = arith.addf %284, %283 : vector<8x128xf32>
    %286 = arith.divf %284, %285 : vector<8x128xf32>
    %287 = vector.extract_strided_slice %274 {offsets = [0, 256], sizes = [8, 128], strides = [1, 1]} : vector<8x512xf32> to vector<8x128xf32>
    %288 = math.tanh %287 : vector<8x128xf32>
    %289 = vector.extract_strided_slice %274 {offsets = [0, 384], sizes = [8, 128], strides = [1, 1]} : vector<8x512xf32> to vector<8x128xf32>
    %290 = arith.negf %289 : vector<8x128xf32>
    %291 = math.exp %290 : vector<8x128xf32>
    %cst_86 = arith.constant 1.000000e+00 : f32
    %292 = vector.broadcast %cst_86 : f32 to vector<8x128xf32>
    %293 = arith.addf %292, %291 : vector<8x128xf32>
    %294 = arith.divf %292, %293 : vector<8x128xf32>
    %295 = arith.mulf %286, %260 : vector<8x128xf32>
    %296 = arith.mulf %280, %288 : vector<8x128xf32>
    %297 = arith.addf %295, %296 : vector<8x128xf32>
    %298 = math.tanh %297 : vector<8x128xf32>
    %299 = arith.mulf %294, %298 : vector<8x128xf32>
    %300 = arith.truncf %299 : vector<8x128xf32> to vector<8x128xbf16>
    %c7_87 = arith.constant 7 : index
    %c0_88 = arith.constant 0 : index
    %c0_89 = arith.constant 0 : index
    %301 = vector.load %arg5[%c7_87, %c0_88, %c0_89] : memref<8x8x128xbf16, #tpu.memory_space<vmem>>, vector<1x8x128xbf16>
    %302 = vector.shape_cast %301 : vector<1x8x128xbf16> to vector<8x128xbf16>
    %303 = vector.shape_cast %300 : vector<8x128xbf16> to vector<1x8x128xbf16>
    tpu.vector_store %arg5[%c7_87, %c0_88, %c0_89], %303 {strides = array<i32>} : memref<8x8x128xbf16, #tpu.memory_space<vmem>>, vector<1x8x128xbf16>,
    %c0_90 = arith.constant 0 : index
    %c0_91 = arith.constant 0 : index
    %304 = vector.load %arg6[%c0_90, %c0_91] : memref<8x128xf32, #tpu.memory_space<vmem>>, vector<8x128xf32>
    tpu.vector_store %arg6[%c0_90, %c0_91], %299 {strides = array<i32>} : memref<8x128xf32, #tpu.memory_space<vmem>>, vector<8x128xf32>,
    %c0_92 = arith.constant 0 : index
    %c0_93 = arith.constant 0 : index
    %305 = vector.load %arg7[%c0_92, %c0_93] : memref<8x128xf32, #tpu.memory_space<vmem>>, vector<8x128xf32>
    tpu.vector_store %arg7[%c0_92, %c0_93], %297 {strides = array<i32>} : memref<8x128xf32, #tpu.memory_space<vmem>>, vector<8x128xf32>,
    return
  }
  func.func @transform_0(%arg0: i32) -> (i32, i32, i32) {
    %c0_i32 = arith.constant 0 : i32
    %c0_i32_0 = arith.constant 0 : i32
    %c0_i32_1 = arith.constant 0 : i32
    return %arg0, %c0_i32, %c0_i32_0 : i32, i32, i32
  }
  func.func @transform_1(%arg0: i32) -> (i32, i32) {
    %c0_i32 = arith.constant 0 : i32
    %c0_i32_0 = arith.constant 0 : i32
    %c0_i32_1 = arith.constant 0 : i32
    return %c0_i32, %c0_i32_0 : i32, i32
  }
  func.func @transform_2(%arg0: i32) -> (i32, i32) {
    %c0_i32 = arith.constant 0 : i32
    %c0_i32_0 = arith.constant 0 : i32
    %c0_i32_1 = arith.constant 0 : i32
    return %c0_i32, %c0_i32_0 : i32, i32
  }
  func.func @transform_3(%arg0: i32) -> (i32, i32) {
    %c0_i32 = arith.constant 0 : i32
    %c0_i32_0 = arith.constant 0 : i32
    %c0_i32_1 = arith.constant 0 : i32
    return %c0_i32, %c0_i32_0 : i32, i32
  }
  func.func @transform_4(%arg0: i32) -> (i32, i32, i32) {
    %c0_i32 = arith.constant 0 : i32
    %c0_i32_0 = arith.constant 0 : i32
    %c0_i32_1 = arith.constant 0 : i32
    return %arg0, %c0_i32, %c0_i32_0 : i32, i32, i32
  }
}

</mosaic_0001>

<bundles_post_ra>
// kernel: decoder_rnn_forward.3
= control target key start
LH: loop header
LB: loop body
LE: loop exit
PB: predicated region body
PF: predicated region fallthrough
CT: control target
= control target key end

     0   :  { %s355_s1 = inlined_call_operand.vmem [shape: bf16[128,128], index: 1, kind: input, shape index: {}]   ;;  %s356_s0 = inlined_call_operand.vmem [shape: bf16[64,128], index: 0, kind: input, shape index: {}]   ;;  %s357_s2 = inlined_call_operand.vmem [shape: f32[1,128], index: 2, kind: input, shape index: {}]   ;;  %s358_s3 = inlined_call_operand.vmem [shape: f32[64,128], index: 3, kind: output, shape index: {}]  }
   0x1   :  { %v260_v0 = vld [vmem:[%s355_s1] sm:$0xff]   ;;  %v261_v1 = vld [vmem:[%s355_s1 + $0x8] sm:$0xff]   ;;  %v262_v2 = vld [vmem:[%s355_s1 + $0x10] sm:$0xff]  }
   0x2   :  { %220 = vmatprep.subr.bf16.mxu0 %v260_v0  ;;  %244 = vmatprep.subr.bf16.mxu1 %v260_v0  ;;  %v263_v3 = vld [vmem:[%s355_s1 + $0x18] sm:$0xff]   ;;  %v268_v4 = vld [vmem:[%s356_s0] sm:$0xff]   ;;  %v269_v5 = vld [vmem:[%s356_s0 + $0x10] sm:$0xff]  }
   0x3   :  { %221 = vmatpush3.bf16.msra.mxu0 %v260_v0  ;;  %252 = vmatpush3.bf16.msra.mxu1 %v260_v0  ;;  %v264_v6 = vld [vmem:[%s355_s1 + $0x20] sm:$0xff]   ;;  %v265_v7 = vld [vmem:[%s355_s1 + $0x28] sm:$0xff]   ;;  %v266_v8 = vld [vmem:[%s355_s1 + $0x30] sm:$0xff]  }
   0x4   :  { %222 = vmatprep.subr.bf16.mxu0 %v261_v1  ;;  %245 = vmatprep.subr.bf16.mxu1 %v261_v1  ;;  %v267_v9 = vld [vmem:[%s355_s1 + $0x38] sm:$0xff]   ;;  %v270_v10 = vld [vmem:[%s356_s0 + $0x8] sm:$0xff]   ;;  %v195_v12 = vld [vmem:[%s357_s2] ss:$0 sm:$0xff] }
   0x5   :  { %236 = vmatprep.mubr.bf16.mxu0 %v268_v4  ;;  %240 = vmatprep.mubr.bf16.mxu1 %v269_v5  ;;  %v271_v11 = vld [vmem:[%s356_s0 + $0x18] sm:$0xff]  }
   0x7   :  { %223 = vmatpush3.bf16.msra.mxu0 %v261_v1  ;;  %253 = vmatpush3.bf16.msra.mxu1 %v261_v1 }
   0x8   :  { %224 = vmatprep.subr.bf16.mxu0 %v262_v2  ;;  %246 = vmatprep.subr.bf16.mxu1 %v262_v2 }
   0xb   :  { %225 = vmatpush3.bf16.msra.mxu0 %v262_v2  ;;  %254 = vmatpush3.bf16.msra.mxu1 %v262_v2 }
   0xc   :  { %226 = vmatprep.subr.bf16.mxu0 %v263_v3  ;;  %247 = vmatprep.subr.bf16.mxu1 %v263_v3 }
   0xf   :  { %227 = vmatpush3.bf16.msra.mxu0 %v263_v3  ;;  %255 = vmatpush3.bf16.msra.mxu1 %v263_v3 }
  0x10   :  { %228 = vmatprep.subr.bf16.mxu0 %v264_v6  ;;  %248 = vmatprep.subr.bf16.mxu1 %v264_v6 }
  0x13   :  { %229 = vmatpush3.bf16.msra.mxu0 %v264_v6  ;;  %256 = vmatpush3.bf16.msra.mxu1 %v264_v6 }
  0x14   :  { %230 = vmatprep.subr.bf16.mxu0 %v265_v7  ;;  %249 = vmatprep.subr.bf16.mxu1 %v265_v7 }
  0x17   :  { %231 = vmatpush3.bf16.msra.mxu0 %v265_v7  ;;  %257 = vmatpush3.bf16.msra.mxu1 %v265_v7 }
  0x18   :  { %232 = vmatprep.subr.bf16.mxu0 %v266_v8  ;;  %250 = vmatprep.subr.bf16.mxu1 %v266_v8 }
  0x1b   :  { %233 = vmatpush3.bf16.msra.mxu0 %v266_v8  ;;  %258 = vmatpush3.bf16.msra.mxu1 %v266_v8 }
  0x1c   :  { %234 = vmatprep.subr.bf16.mxu0 %v267_v9  ;;  %251 = vmatprep.subr.bf16.mxu1 %v267_v9 }
  0x1f   :  { %235 = vmatpush3.bf16.msra.mxu0 %v267_v9  ;;  %259 = vmatpush3.bf16.msra.mxu1 %v267_v9 }
  0x22   :  { %237 = vmatmul.mubr.bf16.vlgmr.msra.gmra.mrb[0].mxu0 %v270_v10  ;;  %241 = vmatmul.mubr.bf16.vlgmr.msra.gmra.mrb[0].mxu1 %v271_v11 }
  0xf5   :  { %v238_v13 = vpop.f32.mrb[0].mxu0  ;;  %v242_v14 = vpop.f32.mrb[0].mxu1 }
  0xf6   :  { %v161_v15 = vadd.f32 %v238_v13, %v195_v12  ;;  %v177_v16 = vadd.f32 %v242_v14, %v195_v12  ;;  %v152_v17 = vpop.f32.mrb[1].mxu0  ;;  %v168_v18 = vpop.f32.mrb[1].mxu1 }
  0xf7   :  { %v153_v19 = vadd.f32 %v195_v12, %v152_v17  ;;  %v169_v20 = vadd.f32 %v195_v12, %v168_v18  ;;  %v239_v21 = vpop.f32.mrb[2].mxu0  ;;  %v243_v22 = vpop.f32.mrb[2].mxu1 }
  0xf8   :  { %185 = vst [vmem:[%s358_s3 + $0x10] sm:$0xff] %v161_v15  ;;  %189 = vst [vmem:[%s358_s3 + $0x30] sm:$0xff] %v177_v16  ;;  %v164_v23 = vadd.f32 %v239_v21, %v195_v12  ;;  %v180_v24 = vadd.f32 %v243_v22, %v195_v12  ;;  %v155_v25 = vpop.f32.mrb[3].mxu0  ;;  %v171_v26 = vpop.f32.mrb[3].mxu1 }
  0xf9   :  { %183 = vst [vmem:[%s358_s3] sm:$0xff] %v153_v19  ;;  %187 = vst [vmem:[%s358_s3 + $0x20] sm:$0xff] %v169_v20  ;;  %v156_v27 = vadd.f32 %v195_v12, %v155_v25  ;;  %v172_v28 = vadd.f32 %v195_v12, %v171_v26 }
  0xfa   :  { %186 = vst [vmem:[%s358_s3 + $0x18] sm:$0xff] %v164_v23  ;;  %190 = vst [vmem:[%s358_s3 + $0x38] sm:$0xff] %v180_v24 }
  0xfb   :  { %184 = vst [vmem:[%s358_s3 + $0x8] sm:$0xff] %v156_v27  ;;  %188 = vst [vmem:[%s358_s3 + $0x28] sm:$0xff] %v172_v28 }

// kernel: decoder_rnn_forward.2
= control target key start
LH: loop header
LB: loop body
LE: loop exit
PB: predicated region body
PF: predicated region fallthrough
CT: control target
= control target key end

     0   :  { %v3740_v1 = vmov 0   ;;  %v2406_v39 = vmov 0.0|0.0   ;;  %s3735_s2 = inlined_call_operand.vmem [shape: bf16[128,512], index: 2, kind: input, shape index: {}]   ;;  %s3736_s1 = inlined_call_operand.vmem [shape: bf16[128,512], index: 1, kind: input, shape index: {}]   ;;  %s3737_s0 = inlined_call_operand.vmem [shape: bf16[8,8,128], index: 0, kind: input, shape index: {}]   ;;  %s3738_s3 = inlined_call_operand.vmem [shape: f32[1,512], index: 3, kind: input, shape index: {}]   ;;  %s3739_s4 = inlined_call_operand.vmem [shape: bf16[8,8,128], index: 4, kind: output, shape index: {}]  }
   0x1   :  { %v2435_v0 = vld [vmem:[%s3735_s2 + $0x4] ss:$16 sps:$4 sm:$0xff]   ;;  %285 = vmatprep.mubr.bf16.mxu0 %v3740_v1  ;;  %326 = vmatprep.mubr.bf16.mxu1 %v3740_v1  ;;  %v2442_v2 = vld [vmem:[%s3735_s2 + $0xc] ss:$16 sps:$4 sm:$0xff]   ;;  %v2448_v3 = vld [vmem:[%s3735_s2] ss:$16 sps:$4 sm:$0xff]  }
   0x2   :  { %253 = vmatprep.subr.bf16.mxu0 %v2435_v0  ;;  %v2453_v4 = vld [vmem:[%s3735_s2 + $0x8] ss:$16 sps:$4 sm:$0xff]   ;;  %294 = vmatprep.subr.bf16.mxu1 %v2442_v2  ;;  %v2459_v5 = vld [vmem:[%s3735_s2 + $0x24] ss:$16 sps:$4 sm:$0xff]   ;;  %v2466_v6 = vld [vmem:[%s3735_s2 + $0x2c] ss:$16 sps:$4 sm:$0xff]  }
   0x3   :  { %254 = vmatpush1.bf16.msra.mxu0 %v2448_v3  ;;  %295 = vmatpush1.bf16.msra.mxu1 %v2453_v4  ;;  %v2471_v7 = vld [vmem:[%s3735_s2 + $0x20] ss:$16 sps:$4 sm:$0xff]   ;;  %v2477_v8 = vld [vmem:[%s3735_s2 + $0x28] ss:$16 sps:$4 sm:$0xff]   ;;  %v2483_v9 = vld [vmem:[%s3735_s2 + $0x44] ss:$16 sps:$4 sm:$0xff]  }
   0x4   :  { %3863 = vst [vmem:[#allocation4_spill] sm:$0xff] %v2471_v7  ;;  %255 = vmatprep.subr.bf16.mxu0 %v2459_v5  ;;  %3864 = vst [vmem:[#allocation5_spill] sm:$0xff] %v2477_v8  ;;  %296 = vmatprep.subr.bf16.mxu1 %v2466_v6  ;;  %v2488_v10 = vld [vmem:[%s3735_s2 + $0x4c] ss:$16 sps:$4 sm:$0xff]   ;;  %v2493_v11 = vld [vmem:[%s3735_s2 + $0x40] ss:$16 sps:$4 sm:$0xff]  }
   0x5   :  { %3865 = vst [vmem:[#allocation6_spill] sm:$0xff] %v2483_v9  ;;  %3866 = vst [vmem:[#allocation7_spill] sm:$0xff] %v2488_v10  ;;  %v2498_v12 = vld [vmem:[%s3735_s2 + $0x48] ss:$16 sps:$4 sm:$0xff]   ;;  %v2505_v13 = vld [vmem:[%s3735_s2 + $0x64] ss:$16 sps:$4 sm:$0xff]  }
   0x6   :  { %3867 = vst [vmem:[#allocation8_spill] sm:$0xff] %v2493_v11  ;;  %3868 = vst [vmem:[#allocation9_spill] sm:$0xff] %v2498_v12  ;;  %v2512_v14 = vld [vmem:[%s3735_s2 + $0x6c] ss:$16 sps:$4 sm:$0xff]   ;;  %v2517_v15 = vld [vmem:[%s3735_s2 + $0x60] ss:$16 sps:$4 sm:$0xff]  }
   0x7   :  { %256 = vmatpush1.bf16.msra.mxu0 %v2471_v7  ;;  %297 = vmatpush1.bf16.msra.mxu1 %v2477_v8  ;;  %3869 = vst [vmem:[#allocation10_spill] sm:$0xff] %v2505_v13  ;;  %3870 = vst [vmem:[#allocation11_spill] sm:$0xff] %v2512_v14  ;;  %v2524_v16 = vld [vmem:[%s3735_s2 + $0x68] ss:$16 sps:$4 sm:$0xff]   ;;  %v2529_v17 = vld [vmem:[%s3735_s2 + $0x84] ss:$16 sps:$4 sm:$0xff]  }
   0x8   :  { %257 = vmatprep.subr.bf16.mxu0 %v2483_v9  ;;  %298 = vmatprep.subr.bf16.mxu1 %v2488_v10  ;;  %3871 = vst [vmem:[#allocation12_spill] sm:$0xff] %v2517_v15  ;;  %3872 = vst [vmem:[#allocation13_spill] sm:$0xff] %v2524_v16  ;;  %v2536_v18 = vld [vmem:[%s3735_s2 + $0x8c] ss:$16 sps:$4 sm:$0xff]   ;;  %v2541_v19 = vld [vmem:[%s3735_s2 + $0x80] ss:$16 sps:$4 sm:$0xff]  }
   0x9   :  { %3873 = vst [vmem:[#allocation14_spill] sm:$0xff] %v2529_v17  ;;  %3874 = vst [vmem:[#allocation15_spill] sm:$0xff] %v2536_v18  ;;  %v2546_v20 = vld [vmem:[%s3735_s2 + $0x88] ss:$16 sps:$4 sm:$0xff]   ;;  %v2553_v21 = vld [vmem:[%s3735_s2 + $0xa4] ss:$16 sps:$4 sm:$0xff]  }
   0xa   :  { %3875 = vst [vmem:[#allocation16_spill] sm:$0xff] %v2541_v19  ;;  %3876 = vst [vmem:[#allocation17_spill] sm:$0xff] %v2546_v20  ;;  %v2560_v22 = vld [vmem:[%s3735_s2 + $0xac] ss:$16 sps:$4 sm:$0xff]   ;;  %v2565_v23 = vld [vmem:[%s3735_s2 + $0xa0] ss:$16 sps:$4 sm:$0xff]  }
   0xb   :  { %258 = vmatpush1.bf16.msra.mxu0 %v2493_v11  ;;  %299 = vmatpush1.bf16.msra.mxu1 %v2498_v12  ;;  %3877 = vst [vmem:[#allocation18_spill] sm:$0xff] %v2553_v21  ;;  %3878 = vst [vmem:[#allocation19_spill] sm:$0xff] %v2560_v22  ;;  %v2572_v24 = vld [vmem:[%s3735_s2 + $0xa8] ss:$16 sps:$4 sm:$0xff]   ;;  %v2577_v25 = vld [vmem:[%s3735_s2 + $0xc4] ss:$16 sps:$4 sm:$0xff]  }
   0xc   :  { %259 = vmatprep.subr.bf16.mxu0 %v2505_v13  ;;  %300 = vmatprep.subr.bf16.mxu1 %v2512_v14  ;;  %3879 = vst [vmem:[#allocation20_spill] sm:$0xff] %v2565_v23  ;;  %3880 = vst [vmem:[#allocation21_spill] sm:$0xff] %v2572_v24  ;;  %v2584_v26 = vld [vmem:[%s3735_s2 + $0xcc] ss:$16 sps:$4 sm:$0xff]   ;;  %v2589_v27 = vld [vmem:[%s3735_s2 + $0xc0] ss:$16 sps:$4 sm:$0xff]  }
   0xd   :  { %3881 = vst [vmem:[#allocation22_spill] sm:$0xff] %v2577_v25  ;;  %3882 = vst [vmem:[#allocation23_spill] sm:$0xff] %v2584_v26  ;;  %v2594_v28 = vld [vmem:[%s3735_s2 + $0xc8] ss:$16 sps:$4 sm:$0xff]   ;;  %v2601_v29 = vld [vmem:[%s3735_s2 + $0xe4] ss:$16 sps:$4 sm:$0xff]  }
   0xe   :  { %3883 = vst [vmem:[#allocation24_spill] sm:$0xff] %v2589_v27  ;;  %3884 = vst [vmem:[#allocation25_spill] sm:$0xff] %v2594_v28  ;;  %v2608_v30 = vld [vmem:[%s3735_s2 + $0xec] ss:$16 sps:$4 sm:$0xff]   ;;  %v2613_v31 = vld [vmem:[%s3735_s2 + $0xe0] ss:$16 sps:$4 sm:$0xff]  }
   0xf   :  { %260 = vmatpush1.bf16.msra.mxu0 %v2517_v15  ;;  %301 = vmatpush1.bf16.msra.mxu1 %v2524_v16  ;;  %3885 = vst [vmem:[#allocation26_spill] sm:$0xff] %v2601_v29  ;;  %3886 = vst [vmem:[#allocation27_spill] sm:$0xff] %v2608_v30  ;;  %v2620_v32 = vld [vmem:[%s3735_s2 + $0xe8] ss:$16 sps:$4 sm:$0xff]   ;;  %v2625_v33 = vld [vmem:[%s3736_s1 + $0x4] ss:$16 sps:$4 sm:$0xff]  }
  0x10   :  { %261 = vmatprep.subr.bf16.mxu0 %v2529_v17  ;;  %302 = vmatprep.subr.bf16.mxu1 %v2536_v18  ;;  %3887 = vst [vmem:[#allocation28_spill] sm:$0xff] %v2613_v31  ;;  %3888 = vst [vmem:[#allocation29_spill] sm:$0xff] %v2620_v32  ;;  %v2632_v34 = vld [vmem:[%s3736_s1 + $0xc] ss:$16 sps:$4 sm:$0xff]   ;;  %v2637_v35 = vld [vmem:[%s3736_s1] ss:$16 sps:$4 sm:$0xff]  }
  0x11   :  { %3889 = vst [vmem:[#allocation30_spill] sm:$0xff] %v2625_v33  ;;  %3890 = vst [vmem:[#allocation31_spill] sm:$0xff] %v2632_v34  ;;  %v2642_v36 = vld [vmem:[%s3736_s1 + $0x8] ss:$16 sps:$4 sm:$0xff]   ;;  %v2649_v37 = vld [vmem:[%s3736_s1 + $0x24] ss:$16 sps:$4 sm:$0xff]  }
  0x12   :  { %v2656_v38 = vld [vmem:[%s3736_s1 + $0x2c] ss:$16 sps:$4 sm:$0xff]   ;;  %v2661_v40 = vld [vmem:[%s3736_s1 + $0x20] ss:$16 sps:$4 sm:$0xff]   ;;  %v2668_v41 = vld [vmem:[%s3736_s1 + $0x28] ss:$16 sps:$4 sm:$0xff]  }
  0x13   :  { %262 = vmatpush1.bf16.msra.mxu0 %v2541_v19  ;;  %303 = vmatpush1.bf16.msra.mxu1 %v2546_v20  ;;  %v2673_v42 = vld [vmem:[%s3736_s1 + $0x44] ss:$16 sps:$4 sm:$0xff]   ;;  %v2680_v43 = vld [vmem:[%s3736_s1 + $0x4c] ss:$16 sps:$4 sm:$0xff]   ;;  %v2687_v44 = vld [vmem:[%s3736_s1 + $0x40] ss:$16 sps:$4 sm:$0xff]  }
  0x14   :  { %263 = vmatprep.subr.bf16.mxu0 %v2553_v21  ;;  %304 = vmatprep.subr.bf16.mxu1 %v2560_v22  ;;  %v2692_v45 = vld [vmem:[%s3736_s1 + $0x48] ss:$16 sps:$4 sm:$0xff]   ;;  %v2699_v46 = vld [vmem:[%s3736_s1 + $0x64] ss:$16 sps:$4 sm:$0xff]   ;;  %v2706_v47 = vld [vmem:[%s3736_s1 + $0x6c] ss:$16 sps:$4 sm:$0xff]  }
  0x15   :  { %v2713_v48 = vld [vmem:[%s3736_s1 + $0x60] ss:$16 sps:$4 sm:$0xff]   ;;  %v2718_v49 = vld [vmem:[%s3736_s1 + $0x68] ss:$16 sps:$4 sm:$0xff]   ;;  %v2725_v50 = vld [vmem:[%s3736_s1 + $0x84] ss:$16 sps:$4 sm:$0xff]  }
  0x16   :  { %v2730_v51 = vld [vmem:[%s3736_s1 + $0x8c] ss:$16 sps:$4 sm:$0xff]   ;;  %v2737_v52 = vld [vmem:[%s3736_s1 + $0x80] ss:$16 sps:$4 sm:$0xff]   ;;  %v2742_v53 = vld [vmem:[%s3736_s1 + $0x88] ss:$16 sps:$4 sm:$0xff]  }
  0x17   :  { %264 = vmatpush1.bf16.msra.mxu0 %v2565_v23  ;;  %305 = vmatpush1.bf16.msra.mxu1 %v2572_v24  ;;  %v2749_v54 = vld [vmem:[%s3736_s1 + $0xa4] ss:$16 sps:$4 sm:$0xff]   ;;  %v2754_v55 = vld [vmem:[%s3736_s1 + $0xac] ss:$16 sps:$4 sm:$0xff]   ;;  %v2761_v56 = vld [vmem:[%s3736_s1 + $0xa0] ss:$16 sps:$4 sm:$0xff]  }
  0x18   :  { %265 = vmatprep.subr.bf16.mxu0 %v2577_v25  ;;  %306 = vmatprep.subr.bf16.mxu1 %v2584_v26  ;;  %v2766_v57 = vld [vmem:[%s3736_s1 + $0xa8] ss:$16 sps:$4 sm:$0xff]   ;;  %v2773_v58 = vld [vmem:[%s3736_s1 + $0xc4] ss:$16 sps:$4 sm:$0xff]   ;;  %v2778_v59 = vld [vmem:[%s3736_s1 + $0xcc] ss:$16 sps:$4 sm:$0xff]  }
  0x19   :  { %v2785_v60 = vld [vmem:[%s3736_s1 + $0xc0] ss:$16 sps:$4 sm:$0xff]   ;;  %v2790_v61 = vld [vmem:[%s3736_s1 + $0xc8] ss:$16 sps:$4 sm:$0xff]   ;;  %v2797_v62 = vld [vmem:[%s3736_s1 + $0xe4] ss:$16 sps:$4 sm:$0xff]  }
  0x1a   :  { %3891 = vst [vmem:[#allocation32_spill] sm:$0xff] %v2790_v61  ;;  %v2802_v63 = vld [vmem:[%s3736_s1 + $0xec] ss:$16 sps:$4 sm:$0xff]  }
  0x1b   :  { %266 = vmatpush1.bf16.msra.mxu0 %v2589_v27  ;;  %307 = vmatpush1.bf16.msra.mxu1 %v2594_v28 }
  0x1c   :  { %267 = vmatprep.subr.bf16.mxu0 %v2601_v29  ;;  %308 = vmatprep.subr.bf16.mxu1 %v2608_v30 }
  0x1f   :  { %268 = vmatpush1.bf16.msra.mxu0 %v2613_v31  ;;  %309 = vmatpush1.bf16.msra.mxu1 %v2620_v32 }
  0x20   :  { %495 = vmatprep.subr.bf16.mxu0 %v2625_v33  ;;  %536 = vmatprep.subr.bf16.mxu1 %v2632_v34 }
  0x22   :  { %286 = vmatmul.mubr.bf16.vlgmr.msra.gmra.mrb[0].mxu0 %v2406_v39  ;;  %327 = vmatmul.mubr.bf16.vlgmr.msra.gmra.mrb[0].mxu1 %v2406_v39  ;;  %v2809_v39 = vld [vmem:[%s3736_s1 + $0xe0] ss:$16 sps:$4 sm:$0xff]  }
  0x23   :  { %496 = vmatpush1.bf16.msra.mxu0 %v2637_v35  ;;  %537 = vmatpush1.bf16.msra.mxu1 %v2642_v36  ;;  %3892 = vst [vmem:[#allocation33_spill] sm:$0xff] %v2809_v39 }
  0x24   :  { %497 = vmatprep.subr.bf16.mxu0 %v2649_v37  ;;  %538 = vmatprep.subr.bf16.mxu1 %v2656_v38 }
  0x25   :  { %527 = vmatprep.mubr.bf16.mxu0 %v3740_v1  ;;  %568 = vmatprep.mubr.bf16.mxu1 %v3740_v1  ;;  %v2814_v1 = vld [vmem:[%s3736_s1 + $0xe8] ss:$16 sps:$4 sm:$0xff]  }
  0x27   :  { %498 = vmatpush1.bf16.msra.mxu0 %v2661_v40  ;;  %539 = vmatpush1.bf16.msra.mxu1 %v2668_v41 }
  0x28   :  { %499 = vmatprep.subr.bf16.mxu0 %v2673_v42  ;;  %540 = vmatprep.subr.bf16.mxu1 %v2680_v43 }
  0x2b   :  { %500 = vmatpush1.bf16.msra.mxu0 %v2687_v44  ;;  %541 = vmatpush1.bf16.msra.mxu1 %v2692_v45 }
  0x2c   :  { %501 = vmatprep.subr.bf16.mxu0 %v2699_v46  ;;  %542 = vmatprep.subr.bf16.mxu1 %v2706_v47 }
  0x2f   :  { %502 = vmatpush1.bf16.msra.mxu0 %v2713_v48  ;;  %543 = vmatpush1.bf16.msra.mxu1 %v2718_v49 }
  0x30   :  { %503 = vmatprep.subr.bf16.mxu0 %v2725_v50  ;;  %544 = vmatprep.subr.bf16.mxu1 %v2730_v51 }
  0x33   :  { %504 = vmatpush1.bf16.msra.mxu0 %v2737_v52  ;;  %545 = vmatpush1.bf16.msra.mxu1 %v2742_v53 }
  0x34   :  { %505 = vmatprep.subr.bf16.mxu0 %v2749_v54  ;;  %546 = vmatprep.subr.bf16.mxu1 %v2754_v55 }
  0x37   :  { %506 = vmatpush1.bf16.msra.mxu0 %v2761_v56  ;;  %547 = vmatpush1.bf16.msra.mxu1 %v2766_v57 }
  0x38   :  { %507 = vmatprep.subr.bf16.mxu0 %v2773_v58  ;;  %548 = vmatprep.subr.bf16.mxu1 %v2778_v59 }
  0x3b   :  { %508 = vmatpush1.bf16.msra.mxu0 %v2785_v60  ;;  %549 = vmatpush1.bf16.msra.mxu1 %v2790_v61  ;;  %v91_v61 = vld [vmem:[%s3737_s0] sm:$0xf] }
  0x3c   :  { %509 = vmatprep.subr.bf16.mxu0 %v2797_v62  ;;  %550 = vmatprep.subr.bf16.mxu1 %v2802_v63 }
  0x3f   :  { %510 = vmatpush1.bf16.msra.mxu0 %v2809_v39  ;;  %551 = vmatpush1.bf16.msra.mxu1 %v2814_v1  ;;  %v3893_v39 = vmov 0  }
  0x40   :  { %630 = vmatprep.subr.bf16.mxu0 %v2435_v0  ;;  %671 = vmatprep.subr.bf16.mxu1 %v2442_v2 }
  0x42   :  { %528 = vmatmul.mubr.bf16.vlgmr.msra.gmra.mrb[4].mxu0 %v91_v61  ;;  %569 = vmatmul.mubr.bf16.vlgmr.msra.gmra.mrb[4].mxu1 %v91_v61 }
  0x43   :  { %631 = vmatpush1.bf16.msra.mxu0 %v2448_v3  ;;  %672 = vmatpush1.bf16.msra.mxu1 %v2453_v4 }
  0x44   :  { %632 = vmatprep.subr.bf16.mxu0 %v2459_v5  ;;  %673 = vmatprep.subr.bf16.mxu1 %v2466_v6 }
  0x45   :  { %662 = vmatprep.mubr.bf16.mxu0 %v3893_v39  ;;  %703 = vmatprep.mubr.bf16.mxu1 %v3893_v39 }
  0x47   :  { %633 = vmatpush1.bf16.msra.mxu0 %v2471_v7  ;;  %674 = vmatpush1.bf16.msra.mxu1 %v2477_v8 }
  0x48   :  { %634 = vmatprep.subr.bf16.mxu0 %v2483_v9  ;;  %675 = vmatprep.subr.bf16.mxu1 %v2488_v10 }
  0x4b   :  { %635 = vmatpush1.bf16.msra.mxu0 %v2493_v11  ;;  %676 = vmatpush1.bf16.msra.mxu1 %v2498_v12 }
  0x4c   :  { %636 = vmatprep.subr.bf16.mxu0 %v2505_v13  ;;  %677 = vmatprep.subr.bf16.mxu1 %v2512_v14 }
  0x4f   :  { %637 = vmatpush1.bf16.msra.mxu0 %v2517_v15  ;;  %678 = vmatpush1.bf16.msra.mxu1 %v2524_v16 }
  0x50   :  { %638 = vmatprep.subr.bf16.mxu0 %v2529_v17  ;;  %679 = vmatprep.subr.bf16.mxu1 %v2536_v18 }
  0x53   :  { %639 = vmatpush1.bf16.msra.mxu0 %v2541_v19  ;;  %680 = vmatpush1.bf16.msra.mxu1 %v2546_v20 }
  0x54   :  { %640 = vmatprep.subr.bf16.mxu0 %v2553_v21  ;;  %681 = vmatprep.subr.bf16.mxu1 %v2560_v22  ;;  %v578_v21 = vlaneseq }
  0x57   :  { %641 = vmatpush1.bf16.msra.mxu0 %v2565_v23  ;;  %682 = vmatpush1.bf16.msra.mxu1 %v2572_v24 }
  0x58   :  { %642 = vmatprep.subr.bf16.mxu0 %v2577_v25  ;;  %683 = vmatprep.subr.bf16.mxu1 %v2584_v26 }
  0x5b   :  { %643 = vmatpush1.bf16.msra.mxu0 %v2589_v27  ;;  %684 = vmatpush1.bf16.msra.mxu1 %v2594_v28 }
  0x5c   :  { %644 = vmatprep.subr.bf16.mxu0 %v2601_v29  ;;  %685 = vmatprep.subr.bf16.mxu1 %v2608_v30  ;;  %v579_v29 = vshrl.u32 %v578_v21, 7 }
  0x5e   :  { %v580_v20 = vsub.s32 0, %v579_v29  ;;  %v592_v16 = vsub.s32 3, %v579_v29 }
  0x5f   :  { %645 = vmatpush1.bf16.msra.mxu0 %v2613_v31  ;;  %686 = vmatpush1.bf16.msra.mxu1 %v2620_v32  ;;  %v88_v31 = vld [vmem:[%s3738_s3] sm:$0xf]  ;;  %v584_v32 = vsub.s32 1, %v579_v29 }
  0x60   :  { %712 = vmatprep.subr.bf16.mxu0 %v2625_v33  ;;  %753 = vmatprep.subr.bf16.mxu1 %v2632_v34  ;;  %v2862_v30 = vrot.slane %v88_v31, %v580_v20  ;;  %v2868_v9 = vrot.slane %v88_v31, %v592_v16 }
  0x61   :  { %v2864_v19 = vrot.slane %v88_v31, %v584_v32  ;;  %v588_v32 = vsub.s32 2, %v579_v29 }
  0xf5   :  { %v287_v61 = vpop.f32.mrb[0].mxu0  ;;  %v328_v25 = vpop.f32.mrb[0].mxu1 }
  0xf6   :  { %v289_v24 = vpop.f32.mrb[1].mxu0  ;;  %v330_v26 = vpop.f32.mrb[1].mxu1 }
  0xf7   :  { %v291_v23 = vpop.f32.mrb[2].mxu0  ;;  %v332_v27 = vpop.f32.mrb[2].mxu1 }
  0xf8   :  { %v292_v22 = vpop.f32.mrb[3].mxu0  ;;  %v333_v28 = vpop.f32.mrb[3].mxu1 }
 0x115   :  { %v529_v33 = vpop.f32.mrb[4].mxu0  ;;  %v570_v34 = vpop.f32.mrb[4].mxu1 }
 0x116   :  { %v530_v18 = vadd.f32 %v529_v33, %v287_v61  ;;  %v571_v17 = vadd.f32 %v570_v34, %v328_v25  ;;  %v531_v23 = vpop.f32.mrb[5].mxu0  ;;  %v572_v27 = vpop.f32.mrb[5].mxu1 }
 0x117   :  { %v532_v22 = vadd.f32 %v531_v23, %v289_v24  ;;  %v573_v28 = vadd.f32 %v572_v27, %v330_v26  ;;  %v533_v21 = vpop.f32.mrb[6].mxu0  ;;  %v574_v15 = vpop.f32.mrb[6].mxu1  ;;  %v2871_v24 = vrot.slane %v88_v31, %v588_v32  ;;  %v3896_v32 = vld [vmem:[#allocation6_spill] sm:$0xff] }
 0x118   :  { %v598_v14 = vadd.f32 %v2862_v30, %v530_v18  ;;  %v534_v13 = vpop.f32.mrb[7].mxu0  ;;  %v575_v12 = vpop.f32.mrb[7].mxu1  ;;  %v3895_v21 = vld [vmem:[#allocation33_spill] sm:$0xff] }
 0x119   :  { %v599_v20 = vadd.f32 %v2864_v19, %v532_v22  ;;  %v601_v25 = vadd.f32 %v2868_v9, %v573_v28  ;;  %v600_v15 = vadd.f32 %v2871_v24, %v571_v17  ;;  %v3894_v28 = vld [vmem:[#allocation32_spill] sm:$0xff] }
 0x11a   :  { %v2077_v11 = vmul.f32 -1.442695, %v598_v14 }
 0x11b   :  { %v2078_v10 = vmul.f32 -1.442695, %v599_v20  ;;  %v2079_v26 = vmul.f32 -1.442695, %v601_v25  ;;  %v2080_v20 = vld [vmem:[%s3737_s0 + $0x4] sm:$0xf] }
 0x11c   :  { %2213 = vpow2.f32 %v2077_v11  ;;  %v3897_v25 = vld [vmem:[#allocation7_spill] sm:$0xff] }
 0x11d   :  { %2215 = vpow2.f32 %v2078_v10 }
 0x11e   :  { %2217 = vpow2.f32 %v2079_v26  ;;  %v3898_v26 = vld [vmem:[#allocation8_spill] sm:$0xff] }
 0x11f   :  { %2219 = vtanh.f32 %v600_v15  ;;  %v3899_v15 = vld [vmem:[#allocation9_spill] sm:$0xff] }
 0x126   :  { %v2214_v33 = vpop.eup %2213 }
 0x127   :  { %v2216_v18 = vpop.eup %2215  ;;  %v605_v13 = vadd.f32 1.0, %v2214_v33  ;;  %v3900_v33 = vld [vmem:[#allocation10_spill] sm:$0xff] }
 0x128   :  { %v611_v12 = vadd.f32 1.0, %v2216_v18  ;;  %v2218_v14 = vpop.eup %2217  ;;  %v3901_v18 = vld [vmem:[#allocation11_spill] sm:$0xff] }
 0x129   :  { %2221 = vrcp.f32 %v605_v13  ;;  %v2220_v16 = vpop.eup %2219  ;;  %v618_v34 = vadd.f32 1.0, %v2218_v14  ;;  %v3902_v13 = vld [vmem:[#allocation12_spill] sm:$0xff]  ;;  %v3904_v14 = vld [vmem:[#allocation14_spill] sm:$0xff] }
 0x12a   :  { %2223 = vrcp.f32 %v611_v12  ;;  %v3903_v12 = vld [vmem:[#allocation13_spill] sm:$0xff] }
 0x12b   :  { %2225 = vrcp.f32 %v618_v34  ;;  %v3909_v34 = vld [vmem:[#allocation19_spill] sm:$0xff] }
 0x133   :  { %v2222_v11 = vpop.eup %2221 }
 0x134   :  { %v2224_v29 = vpop.eup %2223  ;;  %v622_v10 = vmul.f32 %v2222_v11, %v2220_v16  ;;  %v3905_v16 = vld [vmem:[#allocation15_spill] sm:$0xff]  ;;  %v3906_v11 = vld [vmem:[#allocation16_spill] sm:$0xff] }
 0x135   :  { %v621_v61 = vmul.f32 0.0, %v2224_v29  ;;  %v2226_v17 = vpop.eup %2225  ;;  %v3907_v29 = vld [vmem:[#allocation17_spill] sm:$0xff] }
 0x137   :  { %v2874_v31 = vadd.f32 %v622_v10, %v621_v61  ;;  %v3908_v10 = vld [vmem:[#allocation18_spill] sm:$0xff]  ;;  %v3910_v61 = vld [vmem:[#allocation20_spill] sm:$0xff] }
 0x139   :  { %2227 = vtanh.f32 %v2874_v31 }
 0x143   :  { %v2228_v23 = vpop.eup %2227 }
 0x144   :  { %v625_v27 = vmul.f32 %v2228_v23, %v2226_v17  ;;  %v3911_v17 = vld [vmem:[#allocation21_spill] sm:$0xff]  ;;  %v3912_v23 = vld [vmem:[#allocation22_spill] sm:$0xff] }
 0x146   :  { %v626_v22 = vpack.c.bf16 %v625_v27, %v625_v27  ;;  %v3913_v27 = vld [vmem:[#allocation23_spill] sm:$0xff] }
 0x148   :  { %627 = vst [vmem:[%s3739_s4] sm:$0xf] %v626_v22  ;;  %663 = vmatmul.mubr.bf16.vlgmr.msra.gmra.mrb[8].mxu0 %v626_v22  ;;  %704 = vmatmul.mubr.bf16.vlgmr.msra.gmra.mrb[8].mxu1 %v626_v22  ;;  %v3914_v22 = vld [vmem:[#allocation24_spill] sm:$0xff] }
 0x149   :  { %713 = vmatpush1.bf16.msra.mxu0 %v2637_v35  ;;  %754 = vmatpush1.bf16.msra.mxu1 %v2642_v36 }
 0x14a   :  { %714 = vmatprep.subr.bf16.mxu0 %v2649_v37  ;;  %755 = vmatprep.subr.bf16.mxu1 %v2656_v38 }
 0x14b   :  { %744 = vmatprep.mubr.bf16.mxu0 %v3893_v39  ;;  %785 = vmatprep.mubr.bf16.mxu1 %v3893_v39 }
 0x14d   :  { %715 = vmatpush1.bf16.msra.mxu0 %v2661_v40  ;;  %756 = vmatpush1.bf16.msra.mxu1 %v2668_v41 }
 0x14e   :  { %716 = vmatprep.subr.bf16.mxu0 %v2673_v42  ;;  %757 = vmatprep.subr.bf16.mxu1 %v2680_v43 }
 0x151   :  { %717 = vmatpush1.bf16.msra.mxu0 %v2687_v44  ;;  %758 = vmatpush1.bf16.msra.mxu1 %v2692_v45 }
 0x152   :  { %718 = vmatprep.subr.bf16.mxu0 %v2699_v46  ;;  %759 = vmatprep.subr.bf16.mxu1 %v2706_v47 }
 0x155   :  { %719 = vmatpush1.bf16.msra.mxu0 %v2713_v48  ;;  %760 = vmatpush1.bf16.msra.mxu1 %v2718_v49 }
 0x156   :  { %720 = vmatprep.subr.bf16.mxu0 %v2725_v50  ;;  %761 = vmatprep.subr.bf16.mxu1 %v2730_v51 }
 0x159   :  { %721 = vmatpush1.bf16.msra.mxu0 %v2737_v52  ;;  %762 = vmatpush1.bf16.msra.mxu1 %v2742_v53 }
 0x15a   :  { %722 = vmatprep.subr.bf16.mxu0 %v2749_v54  ;;  %763 = vmatprep.subr.bf16.mxu1 %v2754_v55 }
 0x15d   :  { %723 = vmatpush1.bf16.msra.mxu0 %v2761_v56  ;;  %764 = vmatpush1.bf16.msra.mxu1 %v2766_v57 }
 0x15e   :  { %724 = vmatprep.subr.bf16.mxu0 %v2773_v58  ;;  %765 = vmatprep.subr.bf16.mxu1 %v2778_v59 }
 0x161   :  { %725 = vmatpush1.bf16.msra.mxu0 %v2785_v60  ;;  %766 = vmatpush1.bf16.msra.mxu1 %v3894_v28 }
 0x162   :  { %726 = vmatprep.subr.bf16.mxu0 %v2797_v62  ;;  %767 = vmatprep.subr.bf16.mxu1 %v2802_v63 }
 0x165   :  { %727 = vmatpush1.bf16.msra.mxu0 %v3895_v21  ;;  %768 = vmatpush1.bf16.msra.mxu1 %v2814_v1 }
 0x166   :  { %827 = vmatprep.subr.bf16.mxu0 %v2435_v0  ;;  %868 = vmatprep.subr.bf16.mxu1 %v2442_v2 }
 0x168   :  { %745 = vmatmul.mubr.bf16.vlgmr.msra.gmra.mrb[12].mxu0 %v2080_v20  ;;  %786 = vmatmul.mubr.bf16.vlgmr.msra.gmra.mrb[12].mxu1 %v2080_v20  ;;  %v3915_v20 = vld [vmem:[#allocation25_spill] sm:$0xff] }
 0x169   :  { %828 = vmatpush1.bf16.msra.mxu0 %v2448_v3  ;;  %869 = vmatpush1.bf16.msra.mxu1 %v2453_v4 }
 0x16a   :  { %829 = vmatprep.subr.bf16.mxu0 %v2459_v5  ;;  %870 = vmatprep.subr.bf16.mxu1 %v2466_v6 }
 0x16b   :  { %859 = vmatprep.mubr.bf16.mxu0 %v3893_v39  ;;  %900 = vmatprep.mubr.bf16.mxu1 %v3893_v39 }
 0x16d   :  { %830 = vmatpush1.bf16.msra.mxu0 %v2471_v7  ;;  %871 = vmatpush1.bf16.msra.mxu1 %v2477_v8 }
 0x16e   :  { %831 = vmatprep.subr.bf16.mxu0 %v3896_v32  ;;  %872 = vmatprep.subr.bf16.mxu1 %v3897_v25 }
 0x171   :  { %832 = vmatpush1.bf16.msra.mxu0 %v3898_v26  ;;  %873 = vmatpush1.bf16.msra.mxu1 %v3899_v15 }
 0x172   :  { %833 = vmatprep.subr.bf16.mxu0 %v3900_v33  ;;  %874 = vmatprep.subr.bf16.mxu1 %v3901_v18 }
 0x175   :  { %834 = vmatpush1.bf16.msra.mxu0 %v3902_v13  ;;  %875 = vmatpush1.bf16.msra.mxu1 %v3903_v12 }
 0x176   :  { %835 = vmatprep.subr.bf16.mxu0 %v3904_v14  ;;  %876 = vmatprep.subr.bf16.mxu1 %v3905_v16  ;;  %v3916_v16 = vld [vmem:[#allocation26_spill] sm:$0xff] }
 0x179   :  { %836 = vmatpush1.bf16.msra.mxu0 %v3906_v11  ;;  %877 = vmatpush1.bf16.msra.mxu1 %v3907_v29  ;;  %v3917_v11 = vld [vmem:[#allocation27_spill] sm:$0xff]  ;;  %v3918_v29 = vld [vmem:[#allocation28_spill] sm:$0xff] }
 0x17a   :  { %837 = vmatprep.subr.bf16.mxu0 %v3908_v10  ;;  %878 = vmatprep.subr.bf16.mxu1 %v3909_v34  ;;  %v3919_v10 = vld [vmem:[#allocation29_spill] sm:$0xff]  ;;  %v3920_v34 = vld [vmem:[#allocation30_spill] sm:$0xff] }
 0x17d   :  { %838 = vmatpush1.bf16.msra.mxu0 %v3910_v61  ;;  %879 = vmatpush1.bf16.msra.mxu1 %v3911_v17  ;;  %v3921_v61 = vld [vmem:[#allocation31_spill] sm:$0xff] }
 0x17e   :  { %839 = vmatprep.subr.bf16.mxu0 %v3912_v23  ;;  %880 = vmatprep.subr.bf16.mxu1 %v3913_v27 }
 0x181   :  { %840 = vmatpush1.bf16.msra.mxu0 %v3914_v22  ;;  %881 = vmatpush1.bf16.msra.mxu1 %v3915_v20 }
 0x182   :  { %841 = vmatprep.subr.bf16.mxu0 %v3916_v16  ;;  %882 = vmatprep.subr.bf16.mxu1 %v3917_v11 }
 0x185   :  { %842 = vmatpush1.bf16.msra.mxu0 %v3918_v29  ;;  %883 = vmatpush1.bf16.msra.mxu1 %v3919_v10 }
 0x186   :  { %909 = vmatprep.subr.bf16.mxu0 %v3920_v34  ;;  %950 = vmatprep.subr.bf16.mxu1 %v3921_v61 }
 0x21b   :  { %v664_v17 = vpop.f32.mrb[8].mxu0  ;;  %v705_v23 = vpop.f32.mrb[8].mxu1 }
 0x21c   :  { %v666_v14 = vpop.f32.mrb[9].mxu0  ;;  %v707_v27 = vpop.f32.mrb[9].mxu1 }
 0x21d   :  { %v668_v12 = vpop.f32.mrb[10].mxu0  ;;  %v709_v22 = vpop.f32.mrb[10].mxu1 }
 0x21e   :  { %v669_v13 = vpop.f32.mrb[11].mxu0  ;;  %v710_v20 = vpop.f32.mrb[11].mxu1 }
 0x21f   :  { %v3922_v20 = vld [vmem:[#allocation4_spill] sm:$0xff] }
 0x23b   :  { %v746_v18 = vpop.f32.mrb[12].mxu0  ;;  %v787_v16 = vpop.f32.mrb[12].mxu1 }
 0x23c   :  { %v747_v33 = vadd.f32 %v746_v18, %v664_v17  ;;  %v788_v11 = vadd.f32 %v787_v16, %v705_v23  ;;  %v748_v15 = vpop.f32.mrb[13].mxu0  ;;  %v789_v29 = vpop.f32.mrb[13].mxu1 }
 0x23d   :  { %v749_v26 = vadd.f32 %v748_v15, %v666_v14  ;;  %v790_v10 = vadd.f32 %v789_v29, %v707_v27  ;;  %v750_v25 = vpop.f32.mrb[14].mxu0  ;;  %v791_v34 = vpop.f32.mrb[14].mxu1 }
 0x23e   :  { %v794_v61 = vadd.f32 %v747_v33, %v2862_v30  ;;  %v751_v32 = vpop.f32.mrb[15].mxu0  ;;  %v792_v8 = vpop.f32.mrb[15].mxu1  ;;  %v796_v16 = vadd.f32 %v788_v11, %v2871_v24 }
 0x23f   :  { %v795_v7 = vadd.f32 %v749_v26, %v2864_v19  ;;  %v797_v13 = vadd.f32 %v790_v10, %v2868_v9 }
 0x240   :  { %v2081_v12 = vmul.f32 -1.442695, %v794_v61 }
 0x241   :  { %v2082_v22 = vmul.f32 -1.442695, %v795_v7  ;;  %v2083_v18 = vmul.f32 -1.442695, %v797_v13  ;;  %v3931_v13 = vld [vmem:[#allocation13_spill] sm:$0xff] }
 0x242   :  { %2229 = vpow2.f32 %v2081_v12  ;;  %v3923_v12 = vld [vmem:[#allocation5_spill] sm:$0xff] }
 0x243   :  { %2231 = vpow2.f32 %v2082_v22  ;;  %v3926_v22 = vld [vmem:[#allocation8_spill] sm:$0xff] }
 0x244   :  { %2233 = vpow2.f32 %v2083_v18  ;;  %v3932_v18 = vld [vmem:[#allocation14_spill] sm:$0xff] }
 0x245   :  { %2235 = vtanh.f32 %v796_v16  ;;  %v3933_v16 = vld [vmem:[#allocation15_spill] sm:$0xff] }
 0x24c   :  { %v2230_v17 = vpop.eup %2229 }
 0x24d   :  { %v2232_v15 = vpop.eup %2231  ;;  %v801_v14 = vadd.f32 1.0, %v2230_v17  ;;  %v3934_v17 = vld [vmem:[#allocation16_spill] sm:$0xff] }
 0x24e   :  { %v807_v25 = vadd.f32 1.0, %v2232_v15  ;;  %v2234_v8 = vpop.eup %2233  ;;  %v3935_v15 = vld [vmem:[#allocation17_spill] sm:$0xff] }
 0x24f   :  { %2237 = vrcp.f32 %v801_v14  ;;  %v2236_v32 = vpop.eup %2235  ;;  %v814_v29 = vadd.f32 1.0, %v2234_v8  ;;  %v3936_v14 = vld [vmem:[#allocation18_spill] sm:$0xff]  ;;  %v3938_v8 = vld [vmem:[#allocation20_spill] sm:$0xff] }
 0x250   :  { %2239 = vrcp.f32 %v807_v25  ;;  %v3937_v25 = vld [vmem:[#allocation19_spill] sm:$0xff] }
 0x251   :  { %2241 = vrcp.f32 %v814_v29  ;;  %v3943_v29 = vld [vmem:[#allocation25_spill] sm:$0xff] }
 0x259   :  { %v2238_v26 = vpop.eup %2237 }
 0x25a   :  { %v2240_v33 = vpop.eup %2239  ;;  %v818_v7 = vmul.f32 %v2238_v26, %v2236_v32  ;;  %v3939_v32 = vld [vmem:[#allocation21_spill] sm:$0xff]  ;;  %v3940_v26 = vld [vmem:[#allocation22_spill] sm:$0xff] }
 0x25b   :  { %v817_v34 = vmul.f32 %v2240_v33, %v2874_v31  ;;  %v2242_v11 = vpop.eup %2241  ;;  %v2085_v31 = vld [vmem:[%s3737_s0 + $0x8] sm:$0xf]  ;;  %v3941_v33 = vld [vmem:[#allocation23_spill] sm:$0xff] }
 0x25d   :  { %v2956_v10 = vadd.f32 %v818_v7, %v817_v34  ;;  %v3942_v7 = vld [vmem:[#allocation24_spill] sm:$0xff]  ;;  %v3944_v34 = vld [vmem:[#allocation26_spill] sm:$0xff] }
 0x25f   :  { %2243 = vtanh.f32 %v2956_v10 }
 0x269   :  { %v2244_v61 = vpop.eup %2243 }
 0x26a   :  { %v821_v23 = vmul.f32 %v2244_v61, %v2242_v11  ;;  %v3945_v11 = vld [vmem:[#allocation27_spill] sm:$0xff]  ;;  %v3946_v61 = vld [vmem:[#allocation28_spill] sm:$0xff] }
 0x26c   :  { %v822_v27 = vpack.c.bf16 %v821_v23, %v821_v23  ;;  %v3947_v23 = vld [vmem:[#allocation29_spill] sm:$0xff] }
 0x26e   :  { %2084 = vst [vmem:[%s3739_s4 + $0x4] sm:$0xf] %v822_v27  ;;  %860 = vmatmul.mubr.bf16.vlgmr.msra.gmra.mrb[16].mxu0 %v822_v27  ;;  %901 = vmatmul.mubr.bf16.vlgmr.msra.gmra.mrb[16].mxu1 %v822_v27  ;;  %v3948_v27 = vld [vmem:[#allocation30_spill] sm:$0xff] }
 0x26f   :  { %910 = vmatpush1.bf16.msra.mxu0 %v2637_v35  ;;  %951 = vmatpush1.bf16.msra.mxu1 %v2642_v36 }
 0x270   :  { %911 = vmatprep.subr.bf16.mxu0 %v2649_v37  ;;  %952 = vmatprep.subr.bf16.mxu1 %v2656_v38 }
 0x271   :  { %941 = vmatprep.mubr.bf16.mxu0 %v3893_v39  ;;  %982 = vmatprep.mubr.bf16.mxu1 %v3893_v39 }
 0x273   :  { %912 = vmatpush1.bf16.msra.mxu0 %v2661_v40  ;;  %953 = vmatpush1.bf16.msra.mxu1 %v2668_v41 }
 0x274   :  { %913 = vmatprep.subr.bf16.mxu0 %v2673_v42  ;;  %954 = vmatprep.subr.bf16.mxu1 %v2680_v43 }
 0x277   :  { %914 = vmatpush1.bf16.msra.mxu0 %v2687_v44  ;;  %955 = vmatpush1.bf16.msra.mxu1 %v2692_v45 }
 0x278   :  { %915 = vmatprep.subr.bf16.mxu0 %v2699_v46  ;;  %956 = vmatprep.subr.bf16.mxu1 %v2706_v47 }
 0x27b   :  { %916 = vmatpush1.bf16.msra.mxu0 %v2713_v48  ;;  %957 = vmatpush1.bf16.msra.mxu1 %v2718_v49 }
 0x27c   :  { %917 = vmatprep.subr.bf16.mxu0 %v2725_v50  ;;  %958 = vmatprep.subr.bf16.mxu1 %v2730_v51 }
 0x27f   :  { %918 = vmatpush1.bf16.msra.mxu0 %v2737_v52  ;;  %959 = vmatpush1.bf16.msra.mxu1 %v2742_v53 }
 0x280   :  { %919 = vmatprep.subr.bf16.mxu0 %v2749_v54  ;;  %960 = vmatprep.subr.bf16.mxu1 %v2754_v55 }
 0x283   :  { %920 = vmatpush1.bf16.msra.mxu0 %v2761_v56  ;;  %961 = vmatpush1.bf16.msra.mxu1 %v2766_v57 }
 0x284   :  { %921 = vmatprep.subr.bf16.mxu0 %v2773_v58  ;;  %962 = vmatprep.subr.bf16.mxu1 %v2778_v59 }
 0x287   :  { %922 = vmatpush1.bf16.msra.mxu0 %v2785_v60  ;;  %963 = vmatpush1.bf16.msra.mxu1 %v3894_v28 }
 0x288   :  { %923 = vmatprep.subr.bf16.mxu0 %v2797_v62  ;;  %964 = vmatprep.subr.bf16.mxu1 %v2802_v63 }
 0x28b   :  { %924 = vmatpush1.bf16.msra.mxu0 %v3895_v21  ;;  %965 = vmatpush1.bf16.msra.mxu1 %v2814_v1 }
 0x28c   :  { %1024 = vmatprep.subr.bf16.mxu0 %v2435_v0  ;;  %1065 = vmatprep.subr.bf16.mxu1 %v2442_v2  ;;  %v3924_v0 = vld [vmem:[#allocation6_spill] sm:$0xff]  ;;  %v3925_v2 = vld [vmem:[#allocation7_spill] sm:$0xff] }
 0x28e   :  { %942 = vmatmul.mubr.bf16.vlgmr.msra.gmra.mrb[20].mxu0 %v2085_v31  ;;  %983 = vmatmul.mubr.bf16.vlgmr.msra.gmra.mrb[20].mxu1 %v2085_v31  ;;  %v3949_v31 = vld [vmem:[#allocation31_spill] sm:$0xff] }
 0x28f   :  { %1025 = vmatpush1.bf16.msra.mxu0 %v2448_v3  ;;  %1066 = vmatpush1.bf16.msra.mxu1 %v2453_v4  ;;  %v3927_v3 = vld [vmem:[#allocation9_spill] sm:$0xff]  ;;  %v3928_v4 = vld [vmem:[#allocation10_spill] sm:$0xff] }
 0x290   :  { %1026 = vmatprep.subr.bf16.mxu0 %v2459_v5  ;;  %1067 = vmatprep.subr.bf16.mxu1 %v2466_v6  ;;  %v3929_v5 = vld [vmem:[#allocation11_spill] sm:$0xff]  ;;  %v3930_v6 = vld [vmem:[#allocation12_spill] sm:$0xff] }
 0x291   :  { %1056 = vmatprep.mubr.bf16.mxu0 %v3893_v39  ;;  %1097 = vmatprep.mubr.bf16.mxu1 %v3893_v39 }
 0x293   :  { %1027 = vmatpush1.bf16.msra.mxu0 %v3922_v20  ;;  %1068 = vmatpush1.bf16.msra.mxu1 %v3923_v12 }
 0x294   :  { %1028 = vmatprep.subr.bf16.mxu0 %v3924_v0  ;;  %1069 = vmatprep.subr.bf16.mxu1 %v3925_v2 }
 0x297   :  { %1029 = vmatpush1.bf16.msra.mxu0 %v3926_v22  ;;  %1070 = vmatpush1.bf16.msra.mxu1 %v3927_v3 }
 0x298   :  { %1030 = vmatprep.subr.bf16.mxu0 %v3928_v4  ;;  %1071 = vmatprep.subr.bf16.mxu1 %v3929_v5 }
 0x29b   :  { %1031 = vmatpush1.bf16.msra.mxu0 %v3930_v6  ;;  %1072 = vmatpush1.bf16.msra.mxu1 %v3931_v13 }
 0x29c   :  { %1032 = vmatprep.subr.bf16.mxu0 %v3932_v18  ;;  %1073 = vmatprep.subr.bf16.mxu1 %v3933_v16 }
 0x29f   :  { %1033 = vmatpush1.bf16.msra.mxu0 %v3934_v17  ;;  %1074 = vmatpush1.bf16.msra.mxu1 %v3935_v15 }
 0x2a0   :  { %1034 = vmatprep.subr.bf16.mxu0 %v3936_v14  ;;  %1075 = vmatprep.subr.bf16.mxu1 %v3937_v25 }
 0x2a3   :  { %1035 = vmatpush1.bf16.msra.mxu0 %v3938_v8  ;;  %1076 = vmatpush1.bf16.msra.mxu1 %v3939_v32 }
 0x2a4   :  { %1036 = vmatprep.subr.bf16.mxu0 %v3940_v26  ;;  %1077 = vmatprep.subr.bf16.mxu1 %v3941_v33 }
 0x2a7   :  { %1037 = vmatpush1.bf16.msra.mxu0 %v3942_v7  ;;  %1078 = vmatpush1.bf16.msra.mxu1 %v3943_v29 }
 0x2a8   :  { %1038 = vmatprep.subr.bf16.mxu0 %v3944_v34  ;;  %1079 = vmatprep.subr.bf16.mxu1 %v3945_v11 }
 0x2ab   :  { %1039 = vmatpush1.bf16.msra.mxu0 %v3946_v61  ;;  %1080 = vmatpush1.bf16.msra.mxu1 %v3947_v23 }
 0x2ac   :  { %1106 = vmatprep.subr.bf16.mxu0 %v3948_v27  ;;  %1147 = vmatprep.subr.bf16.mxu1 %v3949_v31 }
 0x341   :  { %v861_v20 = vpop.f32.mrb[16].mxu0  ;;  %v902_v12 = vpop.f32.mrb[16].mxu1 }
 0x342   :  { %v863_v0 = vpop.f32.mrb[17].mxu0  ;;  %v904_v2 = vpop.f32.mrb[17].mxu1 }
 0x343   :  { %v865_v22 = vpop.f32.mrb[18].mxu0  ;;  %v906_v3 = vpop.f32.mrb[18].mxu1 }
 0x344   :  { %v866_v4 = vpop.f32.mrb[19].mxu0  ;;  %v907_v5 = vpop.f32.mrb[19].mxu1 }
 0x361   :  { %v943_v6 = vpop.f32.mrb[20].mxu0  ;;  %v984_v13 = vpop.f32.mrb[20].mxu1 }
 0x362   :  { %v944_v18 = vadd.f32 %v943_v6, %v861_v20  ;;  %v985_v16 = vadd.f32 %v984_v13, %v902_v12  ;;  %v945_v17 = vpop.f32.mrb[21].mxu0  ;;  %v986_v15 = vpop.f32.mrb[21].mxu1 }
 0x363   :  { %v946_v14 = vadd.f32 %v945_v17, %v863_v0  ;;  %v987_v25 = vadd.f32 %v986_v15, %v904_v2  ;;  %v947_v8 = vpop.f32.mrb[22].mxu0  ;;  %v988_v32 = vpop.f32.mrb[22].mxu1 }
 0x364   :  { %v991_v26 = vadd.f32 %v944_v18, %v2862_v30  ;;  %v948_v33 = vpop.f32.mrb[23].mxu0  ;;  %v989_v7 = vpop.f32.mrb[23].mxu1  ;;  %v993_v27 = vadd.f32 %v985_v16, %v2871_v24  ;;  %v3270_v8 = vld [vmem:[%s3735_s2 + $0xe8] ss:$16 sps:$4 sm:$0xff]   ;;  %v3276_v32 = vld [vmem:[%s3736_s1 + $0x4] ss:$16 sps:$4 sm:$0xff]  }
 0x365   :  { %v992_v29 = vadd.f32 %v946_v14, %v2864_v19  ;;  %v994_v61 = vadd.f32 %v987_v25, %v2868_v9  ;;  %v3264_v25 = vld [vmem:[%s3735_s2 + $0xe0] ss:$16 sps:$4 sm:$0xff]   ;;  %3975 = vst [vmem:[#allocation27_spill] sm:$0xff] %v3270_v8  ;;  %3976 = vst [vmem:[#allocation28_spill] sm:$0xff] %v3276_v32 }
 0x366   :  { %v2086_v34 = vmul.f32 -1.442695, %v991_v26  ;;  %3974 = vst [vmem:[#allocation26_spill] sm:$0xff] %v3264_v25  ;;  %v3282_v26 = vld [vmem:[%s3736_s1 + $0xc] ss:$16 sps:$4 sm:$0xff]  }
 0x367   :  { %v2087_v11 = vmul.f32 -1.442695, %v992_v29  ;;  %v2088_v23 = vmul.f32 -1.442695, %v994_v61  ;;  %3977 = vst [vmem:[#allocation29_spill] sm:$0xff] %v3282_v26 }
 0x368   :  { %2245 = vpow2.f32 %v2086_v34 }
 0x369   :  { %2247 = vpow2.f32 %v2087_v11 }
 0x36a   :  { %2249 = vpow2.f32 %v2088_v23 }
 0x36b   :  { %2251 = vtanh.f32 %v993_v27 }
 0x372   :  { %v2246_v31 = vpop.eup %2245 }
 0x373   :  { %v2248_v20 = vpop.eup %2247  ;;  %v998_v12 = vadd.f32 1.0, %v2246_v31 }
 0x374   :  { %v1004_v0 = vadd.f32 1.0, %v2248_v20  ;;  %v2250_v2 = vpop.eup %2249 }
 0x375   :  { %2253 = vrcp.f32 %v998_v12  ;;  %v2252_v22 = vpop.eup %2251  ;;  %v1011_v6 = vadd.f32 1.0, %v2250_v2 }
 0x376   :  { %2255 = vrcp.f32 %v1004_v0 }
 0x377   :  { %2257 = vrcp.f32 %v1011_v6 }
 0x37f   :  { %v2254_v3 = vpop.eup %2253 }
 0x380   :  { %v2256_v4 = vpop.eup %2255  ;;  %v1015_v5 = vmul.f32 %v2254_v3, %v2252_v22 }
 0x381   :  { %v1014_v13 = vmul.f32 %v2256_v4, %v2956_v10  ;;  %v2258_v16 = vpop.eup %2257  ;;  %v3258_v10 = vld [vmem:[%s3735_s2 + $0xec] ss:$16 sps:$4 sm:$0xff]  }
 0x382   :  { %3973 = vst [vmem:[#allocation25_spill] sm:$0xff] %v3258_v10 }
 0x383   :  { %v3038_v18 = vadd.f32 %v1015_v5, %v1014_v13 }
 0x385   :  { %2259 = vtanh.f32 %v3038_v18 }
 0x38f   :  { %v2260_v17 = vpop.eup %2259 }
 0x390   :  { %v1018_v15 = vmul.f32 %v2260_v17, %v2258_v16 }
 0x392   :  { %v1019_v14 = vpack.c.bf16 %v1018_v15, %v1018_v15 }
 0x394   :  { %2089 = vst [vmem:[%s3739_s4 + $0x8] sm:$0xf] %v1019_v14  ;;  %1057 = vmatmul.mubr.bf16.vlgmr.msra.gmra.mrb[24].mxu0 %v1019_v14  ;;  %1098 = vmatmul.mubr.bf16.vlgmr.msra.gmra.mrb[24].mxu1 %v1019_v14 }
 0x395   :  { %1107 = vmatpush1.bf16.msra.mxu0 %v2637_v35  ;;  %1148 = vmatpush1.bf16.msra.mxu1 %v2642_v36  ;;  %v2090_v35 = vld [vmem:[%s3737_s0 + $0xc] sm:$0xf]  ;;  %v3082_v36 = vld [vmem:[%s3735_s2 + $0x4] ss:$16 sps:$4 sm:$0xff]  }
 0x396   :  { %1108 = vmatprep.subr.bf16.mxu0 %v2649_v37  ;;  %1149 = vmatprep.subr.bf16.mxu1 %v2656_v38  ;;  %v3088_v37 = vld [vmem:[%s3735_s2 + $0xc] ss:$16 sps:$4 sm:$0xff]   ;;  %v3100_v38 = vld [vmem:[%s3735_s2 + $0x8] ss:$16 sps:$4 sm:$0xff]  }
 0x397   :  { %1138 = vmatprep.mubr.bf16.mxu0 %v3893_v39  ;;  %1179 = vmatprep.mubr.bf16.mxu1 %v3893_v39 }
 0x399   :  { %1109 = vmatpush1.bf16.msra.mxu0 %v2661_v40  ;;  %1150 = vmatpush1.bf16.msra.mxu1 %v2668_v41  ;;  %v3106_v40 = vld [vmem:[%s3735_s2 + $0x24] ss:$16 sps:$4 sm:$0xff]   ;;  %v3112_v41 = vld [vmem:[%s3735_s2 + $0x2c] ss:$16 sps:$4 sm:$0xff]  }
 0x39a   :  { %1110 = vmatprep.subr.bf16.mxu0 %v2673_v42  ;;  %1151 = vmatprep.subr.bf16.mxu1 %v2680_v43  ;;  %v3120_v42 = vld [vmem:[%s3735_s2 + $0x20] ss:$16 sps:$4 sm:$0xff]   ;;  %v3126_v43 = vld [vmem:[%s3735_s2 + $0x28] ss:$16 sps:$4 sm:$0xff]  }
 0x39b   :  { %3950 = vst [vmem:[#allocation32_spill] sm:$0xff] %v3120_v42  ;;  %3951 = vst [vmem:[#allocation33_spill] sm:$0xff] %v3126_v43 }
 0x39d   :  { %1111 = vmatpush1.bf16.msra.mxu0 %v2687_v44  ;;  %1152 = vmatpush1.bf16.msra.mxu1 %v2692_v45  ;;  %v3132_v44 = vld [vmem:[%s3735_s2 + $0x44] ss:$16 sps:$4 sm:$0xff]   ;;  %v3138_v45 = vld [vmem:[%s3735_s2 + $0x4c] ss:$16 sps:$4 sm:$0xff]  }
 0x39e   :  { %1112 = vmatprep.subr.bf16.mxu0 %v2699_v46  ;;  %1153 = vmatprep.subr.bf16.mxu1 %v2706_v47  ;;  %3952 = vst [vmem:[#allocation4_spill] sm:$0xff] %v3132_v44  ;;  %3953 = vst [vmem:[#allocation5_spill] sm:$0xff] %v3138_v45  ;;  %v3144_v46 = vld [vmem:[%s3735_s2 + $0x40] ss:$16 sps:$4 sm:$0xff]   ;;  %v3150_v47 = vld [vmem:[%s3735_s2 + $0x48] ss:$16 sps:$4 sm:$0xff]  }
 0x39f   :  { %3954 = vst [vmem:[#allocation6_spill] sm:$0xff] %v3144_v46  ;;  %3955 = vst [vmem:[#allocation7_spill] sm:$0xff] %v3150_v47 }
 0x3a1   :  { %1113 = vmatpush1.bf16.msra.mxu0 %v2713_v48  ;;  %1154 = vmatpush1.bf16.msra.mxu1 %v2718_v49  ;;  %v3156_v48 = vld [vmem:[%s3735_s2 + $0x64] ss:$16 sps:$4 sm:$0xff]   ;;  %v3162_v49 = vld [vmem:[%s3735_s2 + $0x6c] ss:$16 sps:$4 sm:$0xff]  }
 0x3a2   :  { %1114 = vmatprep.subr.bf16.mxu0 %v2725_v50  ;;  %1155 = vmatprep.subr.bf16.mxu1 %v2730_v51  ;;  %3956 = vst [vmem:[#allocation8_spill] sm:$0xff] %v3156_v48  ;;  %3957 = vst [vmem:[#allocation9_spill] sm:$0xff] %v3162_v49  ;;  %v3168_v50 = vld [vmem:[%s3735_s2 + $0x60] ss:$16 sps:$4 sm:$0xff]   ;;  %v3174_v51 = vld [vmem:[%s3735_s2 + $0x68] ss:$16 sps:$4 sm:$0xff]  }
 0x3a3   :  { %3958 = vst [vmem:[#allocation10_spill] sm:$0xff] %v3168_v50  ;;  %3959 = vst [vmem:[#allocation11_spill] sm:$0xff] %v3174_v51 }
 0x3a5   :  { %1115 = vmatpush1.bf16.msra.mxu0 %v2737_v52  ;;  %1156 = vmatpush1.bf16.msra.mxu1 %v2742_v53  ;;  %v3180_v52 = vld [vmem:[%s3735_s2 + $0x84] ss:$16 sps:$4 sm:$0xff]   ;;  %v3186_v53 = vld [vmem:[%s3735_s2 + $0x8c] ss:$16 sps:$4 sm:$0xff]  }
 0x3a6   :  { %1116 = vmatprep.subr.bf16.mxu0 %v2749_v54  ;;  %1157 = vmatprep.subr.bf16.mxu1 %v2754_v55  ;;  %3960 = vst [vmem:[#allocation12_spill] sm:$0xff] %v3180_v52  ;;  %3961 = vst [vmem:[#allocation13_spill] sm:$0xff] %v3186_v53  ;;  %v3192_v54 = vld [vmem:[%s3735_s2 + $0x80] ss:$16 sps:$4 sm:$0xff]   ;;  %v3198_v55 = vld [vmem:[%s3735_s2 + $0x88] ss:$16 sps:$4 sm:$0xff]  }
 0x3a7   :  { %3962 = vst [vmem:[#allocation14_spill] sm:$0xff] %v3192_v54  ;;  %3963 = vst [vmem:[#allocation15_spill] sm:$0xff] %v3198_v55 }
 0x3a9   :  { %1117 = vmatpush1.bf16.msra.mxu0 %v2761_v56  ;;  %1158 = vmatpush1.bf16.msra.mxu1 %v2766_v57  ;;  %v3204_v56 = vld [vmem:[%s3735_s2 + $0xa4] ss:$16 sps:$4 sm:$0xff]   ;;  %v3210_v57 = vld [vmem:[%s3735_s2 + $0xac] ss:$16 sps:$4 sm:$0xff]  }
 0x3aa   :  { %1118 = vmatprep.subr.bf16.mxu0 %v2773_v58  ;;  %1159 = vmatprep.subr.bf16.mxu1 %v2778_v59  ;;  %3964 = vst [vmem:[#allocation16_spill] sm:$0xff] %v3204_v56  ;;  %3965 = vst [vmem:[#allocation17_spill] sm:$0xff] %v3210_v57  ;;  %v3216_v58 = vld [vmem:[%s3735_s2 + $0xa0] ss:$16 sps:$4 sm:$0xff]   ;;  %v3222_v59 = vld [vmem:[%s3735_s2 + $0xa8] ss:$16 sps:$4 sm:$0xff]  }
 0x3ab   :  { %3966 = vst [vmem:[#allocation18_spill] sm:$0xff] %v3216_v58  ;;  %3967 = vst [vmem:[#allocation19_spill] sm:$0xff] %v3222_v59 }
 0x3ad   :  { %1119 = vmatpush1.bf16.msra.mxu0 %v2785_v60  ;;  %1160 = vmatpush1.bf16.msra.mxu1 %v3894_v28  ;;  %v3228_v60 = vld [vmem:[%s3735_s2 + $0xc4] ss:$16 sps:$4 sm:$0xff]   ;;  %v3246_v28 = vld [vmem:[%s3735_s2 + $0xc8] ss:$16 sps:$4 sm:$0xff]  }
 0x3ae   :  { %1120 = vmatprep.subr.bf16.mxu0 %v2797_v62  ;;  %1161 = vmatprep.subr.bf16.mxu1 %v2802_v63  ;;  %3968 = vst [vmem:[#allocation20_spill] sm:$0xff] %v3228_v60  ;;  %v3234_v62 = vld [vmem:[%s3735_s2 + $0xcc] ss:$16 sps:$4 sm:$0xff]   ;;  %v3240_v63 = vld [vmem:[%s3735_s2 + $0xc0] ss:$16 sps:$4 sm:$0xff]   ;;  %3971 = vst [vmem:[#allocation23_spill] sm:$0xff] %v3246_v28 }
 0x3af   :  { %3969 = vst [vmem:[#allocation21_spill] sm:$0xff] %v3234_v62  ;;  %3970 = vst [vmem:[#allocation22_spill] sm:$0xff] %v3240_v63 }
 0x3b1   :  { %1121 = vmatpush1.bf16.msra.mxu0 %v3895_v21  ;;  %1162 = vmatpush1.bf16.msra.mxu1 %v2814_v1  ;;  %v3094_v1 = vld [vmem:[%s3735_s2] ss:$16 sps:$4 sm:$0xff]   ;;  %v3252_v21 = vld [vmem:[%s3735_s2 + $0xe4] ss:$16 sps:$4 sm:$0xff]  }
 0x3b2   :  { %1221 = vmatprep.subr.bf16.mxu0 %v3082_v36  ;;  %1262 = vmatprep.subr.bf16.mxu1 %v3088_v37  ;;  %3972 = vst [vmem:[#allocation24_spill] sm:$0xff] %v3252_v21 }
 0x3b4   :  { %1139 = vmatmul.mubr.bf16.vlgmr.msra.gmra.mrb[28].mxu0 %v2090_v35  ;;  %1180 = vmatmul.mubr.bf16.vlgmr.msra.gmra.mrb[28].mxu1 %v2090_v35 }
 0x3b5   :  { %1222 = vmatpush1.bf16.msra.mxu0 %v3094_v1  ;;  %1263 = vmatpush1.bf16.msra.mxu1 %v3100_v38 }
 0x3b6   :  { %1223 = vmatprep.subr.bf16.mxu0 %v3106_v40  ;;  %1264 = vmatprep.subr.bf16.mxu1 %v3112_v41 }
 0x3b7   :  { %1253 = vmatprep.mubr.bf16.mxu0 %v3893_v39  ;;  %1294 = vmatprep.mubr.bf16.mxu1 %v3893_v39 }
 0x3b9   :  { %1224 = vmatpush1.bf16.msra.mxu0 %v3120_v42  ;;  %1265 = vmatpush1.bf16.msra.mxu1 %v3126_v43 }
 0x3ba   :  { %1225 = vmatprep.subr.bf16.mxu0 %v3132_v44  ;;  %1266 = vmatprep.subr.bf16.mxu1 %v3138_v45 }
 0x3bd   :  { %1226 = vmatpush1.bf16.msra.mxu0 %v3144_v46  ;;  %1267 = vmatpush1.bf16.msra.mxu1 %v3150_v47 }
 0x3be   :  { %1227 = vmatprep.subr.bf16.mxu0 %v3156_v48  ;;  %1268 = vmatprep.subr.bf16.mxu1 %v3162_v49 }
 0x3c1   :  { %1228 = vmatpush1.bf16.msra.mxu0 %v3168_v50  ;;  %1269 = vmatpush1.bf16.msra.mxu1 %v3174_v51 }
 0x3c2   :  { %1229 = vmatprep.subr.bf16.mxu0 %v3180_v52  ;;  %1270 = vmatprep.subr.bf16.mxu1 %v3186_v53 }
 0x3c5   :  { %1230 = vmatpush1.bf16.msra.mxu0 %v3192_v54  ;;  %1271 = vmatpush1.bf16.msra.mxu1 %v3198_v55 }
 0x3c6   :  { %1231 = vmatprep.subr.bf16.mxu0 %v3204_v56  ;;  %1272 = vmatprep.subr.bf16.mxu1 %v3210_v57 }
 0x3c9   :  { %1232 = vmatpush1.bf16.msra.mxu0 %v3216_v58  ;;  %1273 = vmatpush1.bf16.msra.mxu1 %v3222_v59 }
 0x3ca   :  { %1233 = vmatprep.subr.bf16.mxu0 %v3228_v60  ;;  %1274 = vmatprep.subr.bf16.mxu1 %v3234_v62 }
 0x3cd   :  { %1234 = vmatpush1.bf16.msra.mxu0 %v3240_v63  ;;  %1275 = vmatpush1.bf16.msra.mxu1 %v3246_v28 }
 0x3ce   :  { %1235 = vmatprep.subr.bf16.mxu0 %v3252_v21  ;;  %1276 = vmatprep.subr.bf16.mxu1 %v3258_v10 }
 0x3d1   :  { %1236 = vmatpush1.bf16.msra.mxu0 %v3264_v25  ;;  %1277 = vmatpush1.bf16.msra.mxu1 %v3270_v8 }
 0x3d2   :  { %1303 = vmatprep.subr.bf16.mxu0 %v3276_v32  ;;  %1344 = vmatprep.subr.bf16.mxu1 %v3282_v26 }
 0x467   :  { %v1058_v33 = vpop.f32.mrb[24].mxu0  ;;  %v1099_v7 = vpop.f32.mrb[24].mxu1 }
 0x468   :  { %v1060_v29 = vpop.f32.mrb[25].mxu0  ;;  %v1101_v34 = vpop.f32.mrb[25].mxu1 }
 0x469   :  { %v1062_v11 = vpop.f32.mrb[26].mxu0  ;;  %v1103_v61 = vpop.f32.mrb[26].mxu1 }
 0x46a   :  { %v1063_v23 = vpop.f32.mrb[27].mxu0  ;;  %v1104_v27 = vpop.f32.mrb[27].mxu1 }
 0x487   :  { %v1140_v31 = vpop.f32.mrb[28].mxu0  ;;  %v1181_v20 = vpop.f32.mrb[28].mxu1 }
 0x488   :  { %v1141_v12 = vadd.f32 %v1140_v31, %v1058_v33  ;;  %v1182_v0 = vadd.f32 %v1181_v20, %v1099_v7  ;;  %v1142_v2 = vpop.f32.mrb[29].mxu0  ;;  %v1183_v22 = vpop.f32.mrb[29].mxu1 }
 0x489   :  { %v1143_v3 = vadd.f32 %v1142_v2, %v1060_v29  ;;  %v1184_v4 = vadd.f32 %v1183_v22, %v1101_v34  ;;  %v1144_v5 = vpop.f32.mrb[30].mxu0  ;;  %v1185_v6 = vpop.f32.mrb[30].mxu1 }
 0x48a   :  { %v1188_v13 = vadd.f32 %v1141_v12, %v2862_v30  ;;  %v1145_v16 = vpop.f32.mrb[31].mxu0  ;;  %v1186_v17 = vpop.f32.mrb[31].mxu1  ;;  %v1190_v7 = vadd.f32 %v1182_v0, %v2871_v24 }
 0x48b   :  { %v1189_v15 = vadd.f32 %v1143_v3, %v2864_v19  ;;  %v1191_v11 = vadd.f32 %v1184_v4, %v2868_v9  ;;  %v3299_v16 = vld [vmem:[%s3736_s1] ss:$16 sps:$4 sm:$0xff]   ;;  %v3311_v17 = vld [vmem:[%s3736_s1 + $0x24] ss:$16 sps:$4 sm:$0xff]  }
 0x48c   :  { %v2091_v14 = vmul.f32 -1.442695, %v1188_v13 }
 0x48d   :  { %v2092_v35 = vmul.f32 -1.442695, %v1189_v15  ;;  %v2093_v33 = vmul.f32 -1.442695, %v1191_v11  ;;  %v3317_v15 = vld [vmem:[%s3736_s1 + $0x2c] ss:$16 sps:$4 sm:$0xff]  }
 0x48e   :  { %2261 = vpow2.f32 %v2091_v14  ;;  %v3325_v14 = vld [vmem:[%s3736_s1 + $0x20] ss:$16 sps:$4 sm:$0xff]   ;;  %v3337_v11 = vld [vmem:[%s3736_s1 + $0x44] ss:$16 sps:$4 sm:$0xff]  }
 0x48f   :  { %2263 = vpow2.f32 %v2092_v35  ;;  %v3331_v35 = vld [vmem:[%s3736_s1 + $0x28] ss:$16 sps:$4 sm:$0xff]  }
 0x490   :  { %2265 = vpow2.f32 %v2093_v33  ;;  %v3343_v33 = vld [vmem:[%s3736_s1 + $0x4c] ss:$16 sps:$4 sm:$0xff]  }
 0x491   :  { %2267 = vtanh.f32 %v1190_v7  ;;  %v3349_v7 = vld [vmem:[%s3736_s1 + $0x40] ss:$16 sps:$4 sm:$0xff]  }
 0x498   :  { %v2262_v61 = vpop.eup %2261 }
 0x499   :  { %v2264_v29 = vpop.eup %2263  ;;  %v1195_v34 = vadd.f32 1.0, %v2262_v61  ;;  %v3355_v61 = vld [vmem:[%s3736_s1 + $0x48] ss:$16 sps:$4 sm:$0xff]  }
 0x49a   :  { %v1201_v23 = vadd.f32 1.0, %v2264_v29  ;;  %v2266_v27 = vpop.eup %2265  ;;  %v3361_v29 = vld [vmem:[%s3736_s1 + $0x64] ss:$16 sps:$4 sm:$0xff]  }
 0x49b   :  { %2269 = vrcp.f32 %v1195_v34  ;;  %v2268_v31 = vpop.eup %2267  ;;  %v1208_v22 = vadd.f32 1.0, %v2266_v27  ;;  %v3367_v34 = vld [vmem:[%s3736_s1 + $0x6c] ss:$16 sps:$4 sm:$0xff]   ;;  %v3379_v27 = vld [vmem:[%s3736_s1 + $0x68] ss:$16 sps:$4 sm:$0xff]  }
 0x49c   :  { %2271 = vrcp.f32 %v1201_v23  ;;  %v3373_v23 = vld [vmem:[%s3736_s1 + $0x60] ss:$16 sps:$4 sm:$0xff]  }
 0x49d   :  { %2273 = vrcp.f32 %v1208_v22  ;;  %v3409_v22 = vld [vmem:[%s3736_s1 + $0xa4] ss:$16 sps:$4 sm:$0xff]  }
 0x4a5   :  { %v2270_v20 = vpop.eup %2269 }
 0x4a6   :  { %v2272_v12 = vpop.eup %2271  ;;  %v1212_v2 = vmul.f32 %v2270_v20, %v2268_v31  ;;  %v3385_v31 = vld [vmem:[%s3736_s1 + $0x84] ss:$16 sps:$4 sm:$0xff]   ;;  %v3391_v20 = vld [vmem:[%s3736_s1 + $0x8c] ss:$16 sps:$4 sm:$0xff]  }
 0x4a7   :  { %v1211_v3 = vmul.f32 %v2272_v12, %v3038_v18  ;;  %v2274_v0 = vpop.eup %2273  ;;  %v3305_v18 = vld [vmem:[%s3736_s1 + $0x8] ss:$16 sps:$4 sm:$0xff]   ;;  %v3397_v12 = vld [vmem:[%s3736_s1 + $0x80] ss:$16 sps:$4 sm:$0xff]  }
 0x4a9   :  { %v3290_v4 = vadd.f32 %v1212_v2, %v1211_v3  ;;  %v3403_v2 = vld [vmem:[%s3736_s1 + $0x88] ss:$16 sps:$4 sm:$0xff]   ;;  %v3415_v3 = vld [vmem:[%s3736_s1 + $0xac] ss:$16 sps:$4 sm:$0xff]  }
 0x4ab   :  { %2275 = vtanh.f32 %v3290_v4 }
 0x4b5   :  { %v2276_v5 = vpop.eup %2275 }
 0x4b6   :  { %v1215_v6 = vmul.f32 %v2276_v5, %v2274_v0  ;;  %v3421_v0 = vld [vmem:[%s3736_s1 + $0xa0] ss:$16 sps:$4 sm:$0xff]   ;;  %v3427_v5 = vld [vmem:[%s3736_s1 + $0xa8] ss:$16 sps:$4 sm:$0xff]  }
 0x4b7   :  { %3978 = vst [vmem:[#allocation30_spill] sm:$0xff] %v3421_v0  ;;  %3979 = vst [vmem:[#allocation31_spill] sm:$0xff] %v3427_v5 }
 0x4b8   :  { %v1216_v13 = vpack.c.bf16 %v1215_v6, %v1215_v6  ;;  %v3433_v6 = vld [vmem:[%s3736_s1 + $0xc4] ss:$16 sps:$4 sm:$0xff]  }
 0x4b9   :  { %3980 = vst [vmem:[#allocation34_spill] sm:$0xff] %v3433_v6 }
 0x4ba   :  { %2094 = vst [vmem:[%s3739_s4 + $0xc] sm:$0xf] %v1216_v13  ;;  %1254 = vmatmul.mubr.bf16.vlgmr.msra.gmra.mrb[32].mxu0 %v1216_v13  ;;  %1295 = vmatmul.mubr.bf16.vlgmr.msra.gmra.mrb[32].mxu1 %v1216_v13  ;;  %v3439_v13 = vld [vmem:[%s3736_s1 + $0xcc] ss:$16 sps:$4 sm:$0xff]  }
 0x4bb   :  { %1304 = vmatpush1.bf16.msra.mxu0 %v3299_v16  ;;  %1345 = vmatpush1.bf16.msra.mxu1 %v3305_v18  ;;  %3981 = vst [vmem:[#allocation35_spill] sm:$0xff] %v3439_v13 }
 0x4bc   :  { %1305 = vmatprep.subr.bf16.mxu0 %v3311_v17  ;;  %1346 = vmatprep.subr.bf16.mxu1 %v3317_v15 }
 0x4bd   :  { %1335 = vmatprep.mubr.bf16.mxu0 %v3893_v39  ;;  %1376 = vmatprep.mubr.bf16.mxu1 %v3893_v39 }
 0x4bf   :  { %1306 = vmatpush1.bf16.msra.mxu0 %v3325_v14  ;;  %1347 = vmatpush1.bf16.msra.mxu1 %v3331_v35 }
 0x4c0   :  { %1307 = vmatprep.subr.bf16.mxu0 %v3337_v11  ;;  %1348 = vmatprep.subr.bf16.mxu1 %v3343_v33 }
 0x4c3   :  { %1308 = vmatpush1.bf16.msra.mxu0 %v3349_v7  ;;  %1349 = vmatpush1.bf16.msra.mxu1 %v3355_v61 }
 0x4c4   :  { %1309 = vmatprep.subr.bf16.mxu0 %v3361_v29  ;;  %1350 = vmatprep.subr.bf16.mxu1 %v3367_v34 }
 0x4c7   :  { %1310 = vmatpush1.bf16.msra.mxu0 %v3373_v23  ;;  %1351 = vmatpush1.bf16.msra.mxu1 %v3379_v27 }
 0x4c8   :  { %1311 = vmatprep.subr.bf16.mxu0 %v3385_v31  ;;  %1352 = vmatprep.subr.bf16.mxu1 %v3391_v20 }
 0x4cb   :  { %1312 = vmatpush1.bf16.msra.mxu0 %v3397_v12  ;;  %1353 = vmatpush1.bf16.msra.mxu1 %v3403_v2 }
 0x4cc   :  { %1313 = vmatprep.subr.bf16.mxu0 %v3409_v22  ;;  %1354 = vmatprep.subr.bf16.mxu1 %v3415_v3 }
 0x4cf   :  { %1314 = vmatpush1.bf16.msra.mxu0 %v3421_v0  ;;  %1355 = vmatpush1.bf16.msra.mxu1 %v3427_v5  ;;  %v3445_v0 = vld [vmem:[%s3736_s1 + $0xc0] ss:$16 sps:$4 sm:$0xff]   ;;  %v3451_v5 = vld [vmem:[%s3736_s1 + $0xc8] ss:$16 sps:$4 sm:$0xff]  }
 0x4d0   :  { %1315 = vmatprep.subr.bf16.mxu0 %v3433_v6  ;;  %1356 = vmatprep.subr.bf16.mxu1 %v3439_v13  ;;  %3982 = vst [vmem:[#allocation36_spill] sm:$0xff] %v3445_v0  ;;  %3983 = vst [vmem:[#allocation37_spill] sm:$0xff] %v3451_v5  ;;  %v3457_v6 = vld [vmem:[%s3736_s1 + $0xe4] ss:$16 sps:$4 sm:$0xff]   ;;  %v3463_v13 = vld [vmem:[%s3736_s1 + $0xec] ss:$16 sps:$4 sm:$0xff]  }
 0x4d1   :  { %3984 = vst [vmem:[#allocation38_spill] sm:$0xff] %v3457_v6 }
 0x4d3   :  { %1316 = vmatpush1.bf16.msra.mxu0 %v3445_v0  ;;  %1357 = vmatpush1.bf16.msra.mxu1 %v3451_v5  ;;  %v3469_v0 = vld [vmem:[%s3736_s1 + $0xe0] ss:$16 sps:$4 sm:$0xff]   ;;  %v3475_v5 = vld [vmem:[%s3736_s1 + $0xe8] ss:$16 sps:$4 sm:$0xff]  }
 0x4d4   :  { %1317 = vmatprep.subr.bf16.mxu0 %v3457_v6  ;;  %1358 = vmatprep.subr.bf16.mxu1 %v3463_v13  ;;  %v2095_v6 = vld [vmem:[%s3737_s0 + $0x10] sm:$0xf] }
 0x4d7   :  { %1318 = vmatpush1.bf16.msra.mxu0 %v3469_v0  ;;  %1359 = vmatpush1.bf16.msra.mxu1 %v3475_v5 }
 0x4d8   :  { %1418 = vmatprep.subr.bf16.mxu0 %v3082_v36  ;;  %1459 = vmatprep.subr.bf16.mxu1 %v3088_v37 }
 0x4da   :  { %1336 = vmatmul.mubr.bf16.vlgmr.msra.gmra.mrb[36].mxu0 %v2095_v6  ;;  %1377 = vmatmul.mubr.bf16.vlgmr.msra.gmra.mrb[36].mxu1 %v2095_v6 }
 0x4db   :  { %1419 = vmatpush1.bf16.msra.mxu0 %v3094_v1  ;;  %1460 = vmatpush1.bf16.msra.mxu1 %v3100_v38 }
 0x4dc   :  { %1420 = vmatprep.subr.bf16.mxu0 %v3106_v40  ;;  %1461 = vmatprep.subr.bf16.mxu1 %v3112_v41 }
 0x4dd   :  { %1450 = vmatprep.mubr.bf16.mxu0 %v3893_v39  ;;  %1491 = vmatprep.mubr.bf16.mxu1 %v3893_v39 }
 0x4df   :  { %1421 = vmatpush1.bf16.msra.mxu0 %v3120_v42  ;;  %1462 = vmatpush1.bf16.msra.mxu1 %v3126_v43 }
 0x4e0   :  { %1422 = vmatprep.subr.bf16.mxu0 %v3132_v44  ;;  %1463 = vmatprep.subr.bf16.mxu1 %v3138_v45 }
 0x4e3   :  { %1423 = vmatpush1.bf16.msra.mxu0 %v3144_v46  ;;  %1464 = vmatpush1.bf16.msra.mxu1 %v3150_v47 }
 0x4e4   :  { %1424 = vmatprep.subr.bf16.mxu0 %v3156_v48  ;;  %1465 = vmatprep.subr.bf16.mxu1 %v3162_v49 }
 0x4e7   :  { %1425 = vmatpush1.bf16.msra.mxu0 %v3168_v50  ;;  %1466 = vmatpush1.bf16.msra.mxu1 %v3174_v51 }
 0x4e8   :  { %1426 = vmatprep.subr.bf16.mxu0 %v3180_v52  ;;  %1467 = vmatprep.subr.bf16.mxu1 %v3186_v53 }
 0x4eb   :  { %1427 = vmatpush1.bf16.msra.mxu0 %v3192_v54  ;;  %1468 = vmatpush1.bf16.msra.mxu1 %v3198_v55 }
 0x4ec   :  { %1428 = vmatprep.subr.bf16.mxu0 %v3204_v56  ;;  %1469 = vmatprep.subr.bf16.mxu1 %v3210_v57 }
 0x4ef   :  { %1429 = vmatpush1.bf16.msra.mxu0 %v3216_v58  ;;  %1470 = vmatpush1.bf16.msra.mxu1 %v3222_v59 }
 0x4f0   :  { %1430 = vmatprep.subr.bf16.mxu0 %v3228_v60  ;;  %1471 = vmatprep.subr.bf16.mxu1 %v3234_v62 }
 0x4f3   :  { %1431 = vmatpush1.bf16.msra.mxu0 %v3240_v63  ;;  %1472 = vmatpush1.bf16.msra.mxu1 %v3246_v28 }
 0x4f4   :  { %1432 = vmatprep.subr.bf16.mxu0 %v3252_v21  ;;  %1473 = vmatprep.subr.bf16.mxu1 %v3258_v10 }
 0x4f7   :  { %1433 = vmatpush1.bf16.msra.mxu0 %v3264_v25  ;;  %1474 = vmatpush1.bf16.msra.mxu1 %v3270_v8 }
 0x4f8   :  { %1500 = vmatprep.subr.bf16.mxu0 %v3276_v32  ;;  %1541 = vmatprep.subr.bf16.mxu1 %v3282_v26 }
 0x58d   :  { %v1255_v6 = vpop.f32.mrb[32].mxu0  ;;  %v1296_v60 = vpop.f32.mrb[32].mxu1 }
 0x58e   :  { %v1257_v59 = vpop.f32.mrb[33].mxu0  ;;  %v1298_v62 = vpop.f32.mrb[33].mxu1 }
 0x58f   :  { %v1259_v58 = vpop.f32.mrb[34].mxu0  ;;  %v1300_v63 = vpop.f32.mrb[34].mxu1 }
 0x590   :  { %v1260_v57 = vpop.f32.mrb[35].mxu0  ;;  %v1301_v28 = vpop.f32.mrb[35].mxu1 }
 0x5ad   :  { %v1337_v56 = vpop.f32.mrb[36].mxu0  ;;  %v1378_v21 = vpop.f32.mrb[36].mxu1 }
 0x5ae   :  { %v1338_v55 = vadd.f32 %v1337_v56, %v1255_v6  ;;  %v1379_v10 = vadd.f32 %v1378_v21, %v1296_v60  ;;  %v1339_v54 = vpop.f32.mrb[37].mxu0  ;;  %v1380_v25 = vpop.f32.mrb[37].mxu1  ;;  %v3986_v6 = vld [vmem:[#allocation31_spill] sm:$0xff] }
 0x5af   :  { %v1340_v53 = vadd.f32 %v1339_v54, %v1257_v59  ;;  %v1381_v8 = vadd.f32 %v1380_v25, %v1298_v62  ;;  %v1341_v52 = vpop.f32.mrb[38].mxu0  ;;  %v1382_v32 = vpop.f32.mrb[38].mxu1 }
 0x5b0   :  { %v1385_v26 = vadd.f32 %v1338_v55, %v2862_v30  ;;  %v1342_v51 = vpop.f32.mrb[39].mxu0  ;;  %v1383_v50 = vpop.f32.mrb[39].mxu1  ;;  %v1387_v60 = vadd.f32 %v1379_v10, %v2871_v24 }
 0x5b1   :  { %v1386_v49 = vadd.f32 %v1340_v53, %v2864_v19  ;;  %v1388_v57 = vadd.f32 %v1381_v8, %v2868_v9 }
 0x5b2   :  { %v2096_v58 = vmul.f32 -1.442695, %v1385_v26 }
 0x5b3   :  { %v2097_v63 = vmul.f32 -1.442695, %v1386_v49  ;;  %v2098_v56 = vmul.f32 -1.442695, %v1388_v57  ;;  %v3989_v57 = vld [vmem:[#allocation36_spill] sm:$0xff] }
 0x5b4   :  { %2277 = vpow2.f32 %v2096_v58  ;;  %v3987_v58 = vld [vmem:[#allocation34_spill] sm:$0xff] }
 0x5b5   :  { %2279 = vpow2.f32 %v2097_v63  ;;  %v3988_v63 = vld [vmem:[#allocation35_spill] sm:$0xff] }
 0x5b6   :  { %2281 = vpow2.f32 %v2098_v56  ;;  %v3990_v56 = vld [vmem:[#allocation37_spill] sm:$0xff] }
 0x5b7   :  { %2283 = vtanh.f32 %v1387_v60  ;;  %v3991_v60 = vld [vmem:[#allocation38_spill] sm:$0xff] }
 0x5be   :  { %v2278_v28 = vpop.eup %2277 }
 0x5bf   :  { %v2280_v54 = vpop.eup %2279  ;;  %v1392_v59 = vadd.f32 1.0, %v2278_v28  ;;  %v2100_v28 = vld [vmem:[%s3737_s0 + $0x14] sm:$0xf] }
 0x5c0   :  { %v1398_v52 = vadd.f32 1.0, %v2280_v54  ;;  %v2282_v50 = vpop.eup %2281  ;;  %v3992_v54 = vld [vmem:[#allocation9_spill] sm:$0xff] }
 0x5c1   :  { %2285 = vrcp.f32 %v1392_v59  ;;  %v2284_v51 = vpop.eup %2283  ;;  %v1405_v62 = vadd.f32 1.0, %v2282_v50  ;;  %v3993_v59 = vld [vmem:[#allocation10_spill] sm:$0xff]  ;;  %v3995_v50 = vld [vmem:[#allocation12_spill] sm:$0xff] }
 0x5c2   :  { %2287 = vrcp.f32 %v1398_v52  ;;  %v3994_v52 = vld [vmem:[#allocation11_spill] sm:$0xff] }
 0x5c3   :  { %2289 = vrcp.f32 %v1405_v62  ;;  %v4000_v62 = vld [vmem:[#allocation17_spill] sm:$0xff] }
 0x5cb   :  { %v2286_v53 = vpop.eup %2285 }
 0x5cc   :  { %v2288_v55 = vpop.eup %2287  ;;  %v1409_v49 = vmul.f32 %v2286_v53, %v2284_v51  ;;  %v3996_v51 = vld [vmem:[#allocation13_spill] sm:$0xff]  ;;  %v3997_v53 = vld [vmem:[#allocation14_spill] sm:$0xff] }
 0x5cd   :  { %v1408_v21 = vmul.f32 %v2288_v55, %v3290_v4  ;;  %v2290_v10 = vpop.eup %2289  ;;  %v3985_v4 = vld [vmem:[#allocation30_spill] sm:$0xff]  ;;  %v3998_v55 = vld [vmem:[#allocation15_spill] sm:$0xff] }
 0x5cf   :  { %v3522_v25 = vadd.f32 %v1409_v49, %v1408_v21  ;;  %v3999_v49 = vld [vmem:[#allocation16_spill] sm:$0xff]  ;;  %v4001_v21 = vld [vmem:[#allocation18_spill] sm:$0xff] }
 0x5d1   :  { %2291 = vtanh.f32 %v3522_v25 }
 0x5db   :  { %v2292_v8 = vpop.eup %2291 }
 0x5dc   :  { %v1412_v32 = vmul.f32 %v2292_v8, %v2290_v10  ;;  %v4002_v10 = vld [vmem:[#allocation19_spill] sm:$0xff]  ;;  %v4003_v8 = vld [vmem:[#allocation20_spill] sm:$0xff] }
 0x5de   :  { %v1413_v26 = vpack.c.bf16 %v1412_v32, %v1412_v32  ;;  %v4004_v32 = vld [vmem:[#allocation21_spill] sm:$0xff] }
 0x5e0   :  { %2099 = vst [vmem:[%s3739_s4 + $0x10] sm:$0xf] %v1413_v26  ;;  %1451 = vmatmul.mubr.bf16.vlgmr.msra.gmra.mrb[40].mxu0 %v1413_v26  ;;  %1492 = vmatmul.mubr.bf16.vlgmr.msra.gmra.mrb[40].mxu1 %v1413_v26  ;;  %v4005_v26 = vld [vmem:[#allocation22_spill] sm:$0xff] }
 0x5e1   :  { %1501 = vmatpush1.bf16.msra.mxu0 %v3299_v16  ;;  %1542 = vmatpush1.bf16.msra.mxu1 %v3305_v18 }
 0x5e2   :  { %1502 = vmatprep.subr.bf16.mxu0 %v3311_v17  ;;  %1543 = vmatprep.subr.bf16.mxu1 %v3317_v15 }
 0x5e3   :  { %1532 = vmatprep.mubr.bf16.mxu0 %v3893_v39  ;;  %1573 = vmatprep.mubr.bf16.mxu1 %v3893_v39 }
 0x5e5   :  { %1503 = vmatpush1.bf16.msra.mxu0 %v3325_v14  ;;  %1544 = vmatpush1.bf16.msra.mxu1 %v3331_v35 }
 0x5e6   :  { %1504 = vmatprep.subr.bf16.mxu0 %v3337_v11  ;;  %1545 = vmatprep.subr.bf16.mxu1 %v3343_v33 }
 0x5e9   :  { %1505 = vmatpush1.bf16.msra.mxu0 %v3349_v7  ;;  %1546 = vmatpush1.bf16.msra.mxu1 %v3355_v61 }
 0x5ea   :  { %1506 = vmatprep.subr.bf16.mxu0 %v3361_v29  ;;  %1547 = vmatprep.subr.bf16.mxu1 %v3367_v34 }
 0x5ed   :  { %1507 = vmatpush1.bf16.msra.mxu0 %v3373_v23  ;;  %1548 = vmatpush1.bf16.msra.mxu1 %v3379_v27 }
 0x5ee   :  { %1508 = vmatprep.subr.bf16.mxu0 %v3385_v31  ;;  %1549 = vmatprep.subr.bf16.mxu1 %v3391_v20 }
 0x5f1   :  { %1509 = vmatpush1.bf16.msra.mxu0 %v3397_v12  ;;  %1550 = vmatpush1.bf16.msra.mxu1 %v3403_v2 }
 0x5f2   :  { %1510 = vmatprep.subr.bf16.mxu0 %v3409_v22  ;;  %1551 = vmatprep.subr.bf16.mxu1 %v3415_v3 }
 0x5f5   :  { %1511 = vmatpush1.bf16.msra.mxu0 %v3985_v4  ;;  %1552 = vmatpush1.bf16.msra.mxu1 %v3986_v6 }
 0x5f6   :  { %1512 = vmatprep.subr.bf16.mxu0 %v3987_v58  ;;  %1553 = vmatprep.subr.bf16.mxu1 %v3988_v63 }
 0x5f9   :  { %1513 = vmatpush1.bf16.msra.mxu0 %v3989_v57  ;;  %1554 = vmatpush1.bf16.msra.mxu1 %v3990_v56 }
 0x5fa   :  { %1514 = vmatprep.subr.bf16.mxu0 %v3991_v60  ;;  %1555 = vmatprep.subr.bf16.mxu1 %v3463_v13 }
 0x5fd   :  { %1515 = vmatpush1.bf16.msra.mxu0 %v3469_v0  ;;  %1556 = vmatpush1.bf16.msra.mxu1 %v3475_v5 }
 0x5fe   :  { %1615 = vmatprep.subr.bf16.mxu0 %v3082_v36  ;;  %1656 = vmatprep.subr.bf16.mxu1 %v3088_v37 }
 0x600   :  { %1533 = vmatmul.mubr.bf16.vlgmr.msra.gmra.mrb[44].mxu0 %v2100_v28  ;;  %1574 = vmatmul.mubr.bf16.vlgmr.msra.gmra.mrb[44].mxu1 %v2100_v28  ;;  %v4006_v28 = vld [vmem:[#allocation23_spill] sm:$0xff] }
 0x601   :  { %1616 = vmatpush1.bf16.msra.mxu0 %v3094_v1  ;;  %1657 = vmatpush1.bf16.msra.mxu1 %v3100_v38 }
 0x602   :  { %1617 = vmatprep.subr.bf16.mxu0 %v3106_v40  ;;  %1658 = vmatprep.subr.bf16.mxu1 %v3112_v41 }
 0x603   :  { %1647 = vmatprep.mubr.bf16.mxu0 %v3893_v39  ;;  %1688 = vmatprep.mubr.bf16.mxu1 %v3893_v39 }
 0x605   :  { %1618 = vmatpush1.bf16.msra.mxu0 %v3120_v42  ;;  %1659 = vmatpush1.bf16.msra.mxu1 %v3126_v43 }
 0x606   :  { %1619 = vmatprep.subr.bf16.mxu0 %v3132_v44  ;;  %1660 = vmatprep.subr.bf16.mxu1 %v3138_v45 }
 0x609   :  { %1620 = vmatpush1.bf16.msra.mxu0 %v3144_v46  ;;  %1661 = vmatpush1.bf16.msra.mxu1 %v3150_v47 }
 0x60a   :  { %1621 = vmatprep.subr.bf16.mxu0 %v3156_v48  ;;  %1662 = vmatprep.subr.bf16.mxu1 %v3992_v54 }
 0x60d   :  { %1622 = vmatpush1.bf16.msra.mxu0 %v3993_v59  ;;  %1663 = vmatpush1.bf16.msra.mxu1 %v3994_v52 }
 0x60e   :  { %1623 = vmatprep.subr.bf16.mxu0 %v3995_v50  ;;  %1664 = vmatprep.subr.bf16.mxu1 %v3996_v51  ;;  %v4007_v51 = vld [vmem:[#allocation24_spill] sm:$0xff] }
 0x611   :  { %1624 = vmatpush1.bf16.msra.mxu0 %v3997_v53  ;;  %1665 = vmatpush1.bf16.msra.mxu1 %v3998_v55  ;;  %v4008_v53 = vld [vmem:[#allocation25_spill] sm:$0xff]  ;;  %v4009_v55 = vld [vmem:[#allocation26_spill] sm:$0xff] }
 0x612   :  { %1625 = vmatprep.subr.bf16.mxu0 %v3999_v49  ;;  %1666 = vmatprep.subr.bf16.mxu1 %v4000_v62  ;;  %v4010_v49 = vld [vmem:[#allocation27_spill] sm:$0xff]  ;;  %v4011_v62 = vld [vmem:[#allocation28_spill] sm:$0xff] }
 0x615   :  { %1626 = vmatpush1.bf16.msra.mxu0 %v4001_v21  ;;  %1667 = vmatpush1.bf16.msra.mxu1 %v4002_v10  ;;  %v4012_v21 = vld [vmem:[#allocation29_spill] sm:$0xff] }
 0x616   :  { %1627 = vmatprep.subr.bf16.mxu0 %v4003_v8  ;;  %1668 = vmatprep.subr.bf16.mxu1 %v4004_v32 }
 0x619   :  { %1628 = vmatpush1.bf16.msra.mxu0 %v4005_v26  ;;  %1669 = vmatpush1.bf16.msra.mxu1 %v4006_v28 }
 0x61a   :  { %1629 = vmatprep.subr.bf16.mxu0 %v4007_v51  ;;  %1670 = vmatprep.subr.bf16.mxu1 %v4008_v53 }
 0x61d   :  { %1630 = vmatpush1.bf16.msra.mxu0 %v4009_v55  ;;  %1671 = vmatpush1.bf16.msra.mxu1 %v4010_v49 }
 0x61e   :  { %1697 = vmatprep.subr.bf16.mxu0 %v4011_v62  ;;  %1738 = vmatprep.subr.bf16.mxu1 %v4012_v21 }
 0x6b3   :  { %v1452_v10 = vpop.f32.mrb[40].mxu0  ;;  %v1493_v8 = vpop.f32.mrb[40].mxu1 }
 0x6b4   :  { %v1454_v50 = vpop.f32.mrb[41].mxu0  ;;  %v1495_v32 = vpop.f32.mrb[41].mxu1 }
 0x6b5   :  { %v1456_v52 = vpop.f32.mrb[42].mxu0  ;;  %v1497_v26 = vpop.f32.mrb[42].mxu1 }
 0x6b6   :  { %v1457_v59 = vpop.f32.mrb[43].mxu0  ;;  %v1498_v28 = vpop.f32.mrb[43].mxu1 }
 0x6b7   :  { %v4013_v28 = vld [vmem:[#allocation32_spill] sm:$0xff] }
 0x6d3   :  { %v1534_v54 = vpop.f32.mrb[44].mxu0  ;;  %v1575_v51 = vpop.f32.mrb[44].mxu1 }
 0x6d4   :  { %v1535_v48 = vadd.f32 %v1534_v54, %v1452_v10  ;;  %v1576_v53 = vadd.f32 %v1575_v51, %v1493_v8  ;;  %v1536_v47 = vpop.f32.mrb[45].mxu0  ;;  %v1577_v55 = vpop.f32.mrb[45].mxu1 }
 0x6d5   :  { %v1537_v46 = vadd.f32 %v1536_v47, %v1454_v50  ;;  %v1578_v49 = vadd.f32 %v1577_v55, %v1495_v32  ;;  %v1538_v45 = vpop.f32.mrb[46].mxu0  ;;  %v1579_v62 = vpop.f32.mrb[46].mxu1 }
 0x6d6   :  { %v1582_v21 = vadd.f32 %v1535_v48, %v2862_v30  ;;  %v1539_v44 = vpop.f32.mrb[47].mxu0  ;;  %v1580_v43 = vpop.f32.mrb[47].mxu1  ;;  %v1584_v51 = vadd.f32 %v1576_v53, %v2871_v24 }
 0x6d7   :  { %v1583_v42 = vadd.f32 %v1537_v46, %v2864_v19  ;;  %v1585_v59 = vadd.f32 %v1578_v49, %v2868_v9 }
 0x6d8   :  { %v2101_v52 = vmul.f32 -1.442695, %v1582_v21 }
 0x6d9   :  { %v2102_v26 = vmul.f32 -1.442695, %v1583_v42  ;;  %v2103_v54 = vmul.f32 -1.442695, %v1585_v59  ;;  %v4022_v59 = vld [vmem:[#allocation11_spill] sm:$0xff] }
 0x6da   :  { %2293 = vpow2.f32 %v2101_v52  ;;  %v4014_v52 = vld [vmem:[#allocation33_spill] sm:$0xff] }
 0x6db   :  { %2295 = vpow2.f32 %v2102_v26  ;;  %v4017_v26 = vld [vmem:[#allocation6_spill] sm:$0xff] }
 0x6dc   :  { %2297 = vpow2.f32 %v2103_v54  ;;  %v4023_v54 = vld [vmem:[#allocation12_spill] sm:$0xff] }
 0x6dd   :  { %2299 = vtanh.f32 %v1584_v51  ;;  %v4024_v51 = vld [vmem:[#allocation13_spill] sm:$0xff] }
 0x6e4   :  { %v2294_v10 = vpop.eup %2293 }
 0x6e5   :  { %v2296_v47 = vpop.eup %2295  ;;  %v1589_v50 = vadd.f32 1.0, %v2294_v10  ;;  %v4025_v10 = vld [vmem:[#allocation14_spill] sm:$0xff] }
 0x6e6   :  { %v1595_v45 = vadd.f32 1.0, %v2296_v47  ;;  %v2298_v43 = vpop.eup %2297  ;;  %v4026_v47 = vld [vmem:[#allocation15_spill] sm:$0xff] }
 0x6e7   :  { %2301 = vrcp.f32 %v1589_v50  ;;  %v2300_v44 = vpop.eup %2299  ;;  %v1602_v55 = vadd.f32 1.0, %v2298_v43  ;;  %v4027_v50 = vld [vmem:[#allocation16_spill] sm:$0xff]  ;;  %v4029_v43 = vld [vmem:[#allocation18_spill] sm:$0xff] }
 0x6e8   :  { %2303 = vrcp.f32 %v1595_v45  ;;  %v4028_v45 = vld [vmem:[#allocation17_spill] sm:$0xff] }
 0x6e9   :  { %2305 = vrcp.f32 %v1602_v55  ;;  %v4034_v55 = vld [vmem:[#allocation23_spill] sm:$0xff] }
 0x6f1   :  { %v2302_v46 = vpop.eup %2301 }
 0x6f2   :  { %v2304_v48 = vpop.eup %2303  ;;  %v1606_v42 = vmul.f32 %v2302_v46, %v2300_v44  ;;  %v4030_v44 = vld [vmem:[#allocation19_spill] sm:$0xff]  ;;  %v4031_v46 = vld [vmem:[#allocation20_spill] sm:$0xff] }
 0x6f3   :  { %v1605_v62 = vmul.f32 %v2304_v48, %v3522_v25  ;;  %v2306_v53 = vpop.eup %2305  ;;  %v2105_v25 = vld [vmem:[%s3737_s0 + $0x18] sm:$0xf]  ;;  %v4032_v48 = vld [vmem:[#allocation21_spill] sm:$0xff] }
 0x6f5   :  { %v3604_v49 = vadd.f32 %v1606_v42, %v1605_v62  ;;  %v4033_v42 = vld [vmem:[#allocation22_spill] sm:$0xff]  ;;  %v4035_v62 = vld [vmem:[#allocation24_spill] sm:$0xff] }
 0x6f7   :  { %2307 = vtanh.f32 %v3604_v49 }
 0x701   :  { %v2308_v21 = vpop.eup %2307 }
 0x702   :  { %v1609_v8 = vmul.f32 %v2308_v21, %v2306_v53  ;;  %v4036_v53 = vld [vmem:[#allocation25_spill] sm:$0xff]  ;;  %v4037_v21 = vld [vmem:[#allocation26_spill] sm:$0xff] }
 0x704   :  { %v1610_v32 = vpack.c.bf16 %v1609_v8, %v1609_v8  ;;  %v4038_v8 = vld [vmem:[#allocation27_spill] sm:$0xff] }
 0x706   :  { %2104 = vst [vmem:[%s3739_s4 + $0x14] sm:$0xf] %v1610_v32  ;;  %1648 = vmatmul.mubr.bf16.vlgmr.msra.gmra.mrb[48].mxu0 %v1610_v32  ;;  %1689 = vmatmul.mubr.bf16.vlgmr.msra.gmra.mrb[48].mxu1 %v1610_v32  ;;  %v4039_v32 = vld [vmem:[#allocation28_spill] sm:$0xff] }
 0x707   :  { %1698 = vmatpush1.bf16.msra.mxu0 %v3299_v16  ;;  %1739 = vmatpush1.bf16.msra.mxu1 %v3305_v18 }
 0x708   :  { %1699 = vmatprep.subr.bf16.mxu0 %v3311_v17  ;;  %1740 = vmatprep.subr.bf16.mxu1 %v3317_v15 }
 0x709   :  { %1729 = vmatprep.mubr.bf16.mxu0 %v3893_v39  ;;  %1770 = vmatprep.mubr.bf16.mxu1 %v3893_v39 }
 0x70b   :  { %1700 = vmatpush1.bf16.msra.mxu0 %v3325_v14  ;;  %1741 = vmatpush1.bf16.msra.mxu1 %v3331_v35 }
 0x70c   :  { %1701 = vmatprep.subr.bf16.mxu0 %v3337_v11  ;;  %1742 = vmatprep.subr.bf16.mxu1 %v3343_v33 }
 0x70f   :  { %1702 = vmatpush1.bf16.msra.mxu0 %v3349_v7  ;;  %1743 = vmatpush1.bf16.msra.mxu1 %v3355_v61 }
 0x710   :  { %1703 = vmatprep.subr.bf16.mxu0 %v3361_v29  ;;  %1744 = vmatprep.subr.bf16.mxu1 %v3367_v34 }
 0x713   :  { %1704 = vmatpush1.bf16.msra.mxu0 %v3373_v23  ;;  %1745 = vmatpush1.bf16.msra.mxu1 %v3379_v27 }
 0x714   :  { %1705 = vmatprep.subr.bf16.mxu0 %v3385_v31  ;;  %1746 = vmatprep.subr.bf16.mxu1 %v3391_v20 }
 0x717   :  { %1706 = vmatpush1.bf16.msra.mxu0 %v3397_v12  ;;  %1747 = vmatpush1.bf16.msra.mxu1 %v3403_v2 }
 0x718   :  { %1707 = vmatprep.subr.bf16.mxu0 %v3409_v22  ;;  %1748 = vmatprep.subr.bf16.mxu1 %v3415_v3 }
 0x71b   :  { %1708 = vmatpush1.bf16.msra.mxu0 %v3985_v4  ;;  %1749 = vmatpush1.bf16.msra.mxu1 %v3986_v6 }
 0x71c   :  { %1709 = vmatprep.subr.bf16.mxu0 %v3987_v58  ;;  %1750 = vmatprep.subr.bf16.mxu1 %v3988_v63 }
 0x71f   :  { %1710 = vmatpush1.bf16.msra.mxu0 %v3989_v57  ;;  %1751 = vmatpush1.bf16.msra.mxu1 %v3990_v56 }
 0x720   :  { %1711 = vmatprep.subr.bf16.mxu0 %v3991_v60  ;;  %1752 = vmatprep.subr.bf16.mxu1 %v3463_v13 }
 0x723   :  { %1712 = vmatpush1.bf16.msra.mxu0 %v3469_v0  ;;  %1753 = vmatpush1.bf16.msra.mxu1 %v3475_v5 }
 0x724   :  { %1812 = vmatprep.subr.bf16.mxu0 %v3082_v36  ;;  %1853 = vmatprep.subr.bf16.mxu1 %v3088_v37  ;;  %v4015_v36 = vld [vmem:[#allocation4_spill] sm:$0xff]  ;;  %v4016_v37 = vld [vmem:[#allocation5_spill] sm:$0xff] }
 0x726   :  { %1730 = vmatmul.mubr.bf16.vlgmr.msra.gmra.mrb[52].mxu0 %v2105_v25  ;;  %1771 = vmatmul.mubr.bf16.vlgmr.msra.gmra.mrb[52].mxu1 %v2105_v25  ;;  %v4040_v25 = vld [vmem:[#allocation29_spill] sm:$0xff] }
 0x727   :  { %1813 = vmatpush1.bf16.msra.mxu0 %v3094_v1  ;;  %1854 = vmatpush1.bf16.msra.mxu1 %v3100_v38  ;;  %v4018_v1 = vld [vmem:[#allocation7_spill] sm:$0xff]  ;;  %v4019_v38 = vld [vmem:[#allocation8_spill] sm:$0xff] }
 0x728   :  { %1814 = vmatprep.subr.bf16.mxu0 %v3106_v40  ;;  %1855 = vmatprep.subr.bf16.mxu1 %v3112_v41  ;;  %v4020_v40 = vld [vmem:[#allocation9_spill] sm:$0xff]  ;;  %v4021_v41 = vld [vmem:[#allocation10_spill] sm:$0xff] }
 0x729   :  { %1844 = vmatprep.mubr.bf16.mxu0 %v3893_v39  ;;  %1885 = vmatprep.mubr.bf16.mxu1 %v3893_v39 }
 0x72b   :  { %1815 = vmatpush1.bf16.msra.mxu0 %v4013_v28  ;;  %1856 = vmatpush1.bf16.msra.mxu1 %v4014_v52 }
 0x72c   :  { %1816 = vmatprep.subr.bf16.mxu0 %v4015_v36  ;;  %1857 = vmatprep.subr.bf16.mxu1 %v4016_v37 }
 0x72f   :  { %1817 = vmatpush1.bf16.msra.mxu0 %v4017_v26  ;;  %1858 = vmatpush1.bf16.msra.mxu1 %v4018_v1 }
 0x730   :  { %1818 = vmatprep.subr.bf16.mxu0 %v4019_v38  ;;  %1859 = vmatprep.subr.bf16.mxu1 %v4020_v40 }
 0x733   :  { %1819 = vmatpush1.bf16.msra.mxu0 %v4021_v41  ;;  %1860 = vmatpush1.bf16.msra.mxu1 %v4022_v59 }
 0x734   :  { %1820 = vmatprep.subr.bf16.mxu0 %v4023_v54  ;;  %1861 = vmatprep.subr.bf16.mxu1 %v4024_v51 }
 0x737   :  { %1821 = vmatpush1.bf16.msra.mxu0 %v4025_v10  ;;  %1862 = vmatpush1.bf16.msra.mxu1 %v4026_v47 }
 0x738   :  { %1822 = vmatprep.subr.bf16.mxu0 %v4027_v50  ;;  %1863 = vmatprep.subr.bf16.mxu1 %v4028_v45 }
 0x73b   :  { %1823 = vmatpush1.bf16.msra.mxu0 %v4029_v43  ;;  %1864 = vmatpush1.bf16.msra.mxu1 %v4030_v44 }
 0x73c   :  { %1824 = vmatprep.subr.bf16.mxu0 %v4031_v46  ;;  %1865 = vmatprep.subr.bf16.mxu1 %v4032_v48 }
 0x73f   :  { %1825 = vmatpush1.bf16.msra.mxu0 %v4033_v42  ;;  %1866 = vmatpush1.bf16.msra.mxu1 %v4034_v55 }
 0x740   :  { %1826 = vmatprep.subr.bf16.mxu0 %v4035_v62  ;;  %1867 = vmatprep.subr.bf16.mxu1 %v4036_v53 }
 0x743   :  { %1827 = vmatpush1.bf16.msra.mxu0 %v4037_v21  ;;  %1868 = vmatpush1.bf16.msra.mxu1 %v4038_v8 }
 0x744   :  { %1894 = vmatprep.subr.bf16.mxu0 %v4039_v32  ;;  %1935 = vmatprep.subr.bf16.mxu1 %v4040_v25 }
 0x7d9   :  { %v1649_v28 = vpop.f32.mrb[48].mxu0  ;;  %v1690_v52 = vpop.f32.mrb[48].mxu1 }
 0x7da   :  { %v1651_v36 = vpop.f32.mrb[49].mxu0  ;;  %v1692_v37 = vpop.f32.mrb[49].mxu1 }
 0x7db   :  { %v1653_v26 = vpop.f32.mrb[50].mxu0  ;;  %v1694_v1 = vpop.f32.mrb[50].mxu1 }
 0x7dc   :  { %v1654_v38 = vpop.f32.mrb[51].mxu0  ;;  %v1695_v40 = vpop.f32.mrb[51].mxu1 }
 0x7f9   :  { %v1731_v41 = vpop.f32.mrb[52].mxu0  ;;  %v1772_v59 = vpop.f32.mrb[52].mxu1 }
 0x7fa   :  { %v1732_v54 = vadd.f32 %v1731_v41, %v1649_v28  ;;  %v1773_v51 = vadd.f32 %v1772_v59, %v1690_v52  ;;  %v1733_v10 = vpop.f32.mrb[53].mxu0  ;;  %v1774_v47 = vpop.f32.mrb[53].mxu1 }
 0x7fb   :  { %v1734_v50 = vadd.f32 %v1733_v10, %v1651_v36  ;;  %v1775_v45 = vadd.f32 %v1774_v47, %v1692_v37  ;;  %v1735_v43 = vpop.f32.mrb[54].mxu0  ;;  %v1776_v44 = vpop.f32.mrb[54].mxu1 }
 0x7fc   :  { %v1779_v46 = vadd.f32 %v1732_v54, %v2862_v30  ;;  %v1736_v48 = vpop.f32.mrb[55].mxu0  ;;  %v1777_v42 = vpop.f32.mrb[55].mxu1  ;;  %v1781_v32 = vadd.f32 %v1773_v51, %v2871_v24 }
 0x7fd   :  { %v1780_v55 = vadd.f32 %v1734_v50, %v2864_v19  ;;  %v1782_v21 = vadd.f32 %v1775_v45, %v2868_v9 }
 0x7fe   :  { %v2106_v62 = vmul.f32 -1.442695, %v1779_v46 }
 0x7ff   :  { %v2107_v53 = vmul.f32 -1.442695, %v1780_v55  ;;  %v2108_v8 = vmul.f32 -1.442695, %v1782_v21 }
 0x800   :  { %2309 = vpow2.f32 %v2106_v62 }
 0x801   :  { %2311 = vpow2.f32 %v2107_v53 }
 0x802   :  { %2313 = vpow2.f32 %v2108_v8 }
 0x803   :  { %2315 = vtanh.f32 %v1781_v32 }
 0x80a   :  { %v2310_v25 = vpop.eup %2309 }
 0x80b   :  { %v2312_v28 = vpop.eup %2311  ;;  %v1786_v52 = vadd.f32 1.0, %v2310_v25 }
 0x80c   :  { %v1792_v36 = vadd.f32 1.0, %v2312_v28  ;;  %v2314_v37 = vpop.eup %2313 }
 0x80d   :  { %2317 = vrcp.f32 %v1786_v52  ;;  %v2316_v26 = vpop.eup %2315  ;;  %v1799_v41 = vadd.f32 1.0, %v2314_v37 }
 0x80e   :  { %2319 = vrcp.f32 %v1792_v36 }
 0x80f   :  { %2321 = vrcp.f32 %v1799_v41 }
 0x817   :  { %v2318_v1 = vpop.eup %2317 }
 0x818   :  { %v2320_v38 = vpop.eup %2319  ;;  %v1803_v40 = vmul.f32 %v2318_v1, %v2316_v26 }
 0x819   :  { %v1802_v59 = vmul.f32 %v2320_v38, %v3604_v49  ;;  %v2322_v51 = vpop.eup %2321 }
 0x81b   :  { %v3686_v54 = vadd.f32 %v1803_v40, %v1802_v59 }
 0x81d   :  { %2323 = vtanh.f32 %v3686_v54 }
 0x827   :  { %v2324_v10 = vpop.eup %2323 }
 0x828   :  { %v1806_v47 = vmul.f32 %v2324_v10, %v2322_v51 }
 0x82a   :  { %v1807_v50 = vpack.c.bf16 %v1806_v47, %v1806_v47 }
 0x82c   :  { %2109 = vst [vmem:[%s3739_s4 + $0x18] sm:$0xf] %v1807_v50  ;;  %1845 = vmatmul.mubr.bf16.vlgmr.msra.gmra.mrb[56].mxu0 %v1807_v50  ;;  %1886 = vmatmul.mubr.bf16.vlgmr.msra.gmra.mrb[56].mxu1 %v1807_v50 }
 0x82d   :  { %1895 = vmatpush1.bf16.msra.mxu0 %v3299_v16  ;;  %1936 = vmatpush1.bf16.msra.mxu1 %v3305_v18 }
 0x82e   :  { %1896 = vmatprep.subr.bf16.mxu0 %v3311_v17  ;;  %1937 = vmatprep.subr.bf16.mxu1 %v3317_v15 }
 0x82f   :  { %1926 = vmatprep.mubr.bf16.mxu0 %v3893_v39  ;;  %1967 = vmatprep.mubr.bf16.mxu1 %v3893_v39  ;;  %v2110_v39 = vld [vmem:[%s3737_s0 + $0x1c] sm:$0xf] }
 0x831   :  { %1897 = vmatpush1.bf16.msra.mxu0 %v3325_v14  ;;  %1938 = vmatpush1.bf16.msra.mxu1 %v3331_v35 }
 0x832   :  { %1898 = vmatprep.subr.bf16.mxu0 %v3337_v11  ;;  %1939 = vmatprep.subr.bf16.mxu1 %v3343_v33 }
 0x835   :  { %1899 = vmatpush1.bf16.msra.mxu0 %v3349_v7  ;;  %1940 = vmatpush1.bf16.msra.mxu1 %v3355_v61 }
 0x836   :  { %1900 = vmatprep.subr.bf16.mxu0 %v3361_v29  ;;  %1941 = vmatprep.subr.bf16.mxu1 %v3367_v34 }
 0x839   :  { %1901 = vmatpush1.bf16.msra.mxu0 %v3373_v23  ;;  %1942 = vmatpush1.bf16.msra.mxu1 %v3379_v27 }
 0x83a   :  { %1902 = vmatprep.subr.bf16.mxu0 %v3385_v31  ;;  %1943 = vmatprep.subr.bf16.mxu1 %v3391_v20 }
 0x83d   :  { %1903 = vmatpush1.bf16.msra.mxu0 %v3397_v12  ;;  %1944 = vmatpush1.bf16.msra.mxu1 %v3403_v2 }
 0x83e   :  { %1904 = vmatprep.subr.bf16.mxu0 %v3409_v22  ;;  %1945 = vmatprep.subr.bf16.mxu1 %v3415_v3 }
 0x841   :  { %1905 = vmatpush1.bf16.msra.mxu0 %v3985_v4  ;;  %1946 = vmatpush1.bf16.msra.mxu1 %v3986_v6 }
 0x842   :  { %1906 = vmatprep.subr.bf16.mxu0 %v3987_v58  ;;  %1947 = vmatprep.subr.bf16.mxu1 %v3988_v63 }
 0x845   :  { %1907 = vmatpush1.bf16.msra.mxu0 %v3989_v57  ;;  %1948 = vmatpush1.bf16.msra.mxu1 %v3990_v56 }
 0x846   :  { %1908 = vmatprep.subr.bf16.mxu0 %v3991_v60  ;;  %1949 = vmatprep.subr.bf16.mxu1 %v3463_v13 }
 0x849   :  { %1909 = vmatpush1.bf16.msra.mxu0 %v3469_v0  ;;  %1950 = vmatpush1.bf16.msra.mxu1 %v3475_v5 }
 0x84c   :  { %1927 = vmatmul.mubr.bf16.vlgmr.msra.gmra.mrb[60].mxu0 %v2110_v39  ;;  %1968 = vmatmul.mubr.bf16.vlgmr.msra.gmra.mrb[60].mxu1 %v2110_v39 }
 0x8ff   :  { %v1846_v16 = vpop.f32.mrb[56].mxu0  ;;  %v1887_v18 = vpop.f32.mrb[56].mxu1 }
 0x900   :  { %v1848_v17 = vpop.f32.mrb[57].mxu0  ;;  %v1889_v15 = vpop.f32.mrb[57].mxu1 }
 0x901   :  { %v1850_v14 = vpop.f32.mrb[58].mxu0  ;;  %v1891_v35 = vpop.f32.mrb[58].mxu1 }
 0x902   :  { %v1851_v11 = vpop.f32.mrb[59].mxu0  ;;  %v1892_v33 = vpop.f32.mrb[59].mxu1 }
 0x91f   :  { %v1928_v7 = vpop.f32.mrb[60].mxu0  ;;  %v1969_v61 = vpop.f32.mrb[60].mxu1 }
 0x920   :  { %v1929_v29 = vadd.f32 %v1928_v7, %v1846_v16  ;;  %v1970_v34 = vadd.f32 %v1969_v61, %v1887_v18  ;;  %v1930_v23 = vpop.f32.mrb[61].mxu0  ;;  %v1971_v27 = vpop.f32.mrb[61].mxu1 }
 0x921   :  { %v1931_v31 = vadd.f32 %v1930_v23, %v1848_v17  ;;  %v1972_v20 = vadd.f32 %v1971_v27, %v1889_v15  ;;  %v1932_v12 = vpop.f32.mrb[62].mxu0  ;;  %v1973_v2 = vpop.f32.mrb[62].mxu1 }
 0x922   :  { %v1976_v22 = vadd.f32 %v1929_v29, %v2862_v30  ;;  %v1933_v3 = vpop.f32.mrb[63].mxu0  ;;  %v1974_v0 = vpop.f32.mrb[63].mxu1  ;;  %v1978_v63 = vadd.f32 %v1970_v34, %v2871_v24 }
 0x923   :  { %v1977_v5 = vadd.f32 %v1931_v31, %v2864_v19  ;;  %v1979_v6 = vadd.f32 %v1972_v20, %v2868_v9 }
 0x924   :  { %v2111_v13 = vmul.f32 -1.442695, %v1976_v22 }
 0x925   :  { %v2112_v4 = vmul.f32 -1.442695, %v1977_v5  ;;  %v2113_v58 = vmul.f32 -1.442695, %v1979_v6 }
 0x926   :  { %2325 = vpow2.f32 %v2111_v13 }
 0x927   :  { %2327 = vpow2.f32 %v2112_v4 }
 0x928   :  { %2329 = vpow2.f32 %v2113_v58 }
 0x929   :  { %2331 = vtanh.f32 %v1978_v63 }
 0x930   :  { %v2326_v57 = vpop.eup %2325 }
 0x931   :  { %v2328_v56 = vpop.eup %2327  ;;  %v1983_v60 = vadd.f32 1.0, %v2326_v57 }
 0x932   :  { %v1989_v49 = vadd.f32 1.0, %v2328_v56  ;;  %v2330_v30 = vpop.eup %2329 }
 0x933   :  { %2333 = vrcp.f32 %v1983_v60  ;;  %v2332_v45 = vpop.eup %2331  ;;  %v1996_v46 = vadd.f32 1.0, %v2330_v30 }
 0x934   :  { %2335 = vrcp.f32 %v1989_v49 }
 0x935   :  { %2337 = vrcp.f32 %v1996_v46 }
 0x93d   :  { %v2334_v19 = vpop.eup %2333 }
 0x93e   :  { %v2336_v43 = vpop.eup %2335  ;;  %v2000_v44 = vmul.f32 %v2334_v19, %v2332_v45 }
 0x93f   :  { %v1999_v48 = vmul.f32 %v2336_v43, %v3686_v54  ;;  %v2338_v24 = vpop.eup %2337 }
 0x941   :  { %v2001_v9 = vadd.f32 %v2000_v44, %v1999_v48 }
 0x943   :  { %2339 = vtanh.f32 %v2001_v9 }
 0x94d   :  { %v2340_v42 = vpop.eup %2339 }
 0x94e   :  { %v2003_v55 = vmul.f32 %v2340_v42, %v2338_v24 }
 0x950   :  { %v2004_v62 = vpack.c.bf16 %v2003_v55, %v2003_v55 }
 0x952   :  { %2114 = vst [vmem:[%s3739_s4 + $0x1c] sm:$0xf] %v2004_v62 }

</bundles_post_ra>
